<compile_context>
chip_gen: v5e
topology: v5e:2x2
jax: 0.10.0
libtpu: 0.0.40
codegen_flags: <defaults>
</compile_context>

<pallas_src>
import functools

import numpy as np
import jax
import jax.numpy as jnp
from jax import lax
from jax.experimental import pallas as pl
from jax.experimental.pallas import tpu as pltpu


def _yolo_level_kernel(x_ref, w_ref, b_ref, cc_ref, g_ref, raw_ref, dec_ref,
                       *, no, na):
    """One (batch, spatial-tile) step: 1x1 conv + sigmoid + YOLO box decode.

    x_ref  : (1, C, S)       NCHW activations (C on sublanes, spatial on lanes)
    w_ref  : (C, N)          conv weight, N = na * no
    b_ref  : (1, N)          conv bias
    cc_ref : (8, N)          per-column constants:
                             row0 = A   (2*stride for xy cols, 1 for conf/cls)
                             row1 = B   (4*anchor for wh cols, else 0)
                             row2 = sel_x (column is the x coordinate)
                             row3 = sel_y (column is the y coordinate)
    g_ref  : (S, 2)          per-cell ((gx-0.5)*stride, (gy-0.5)*stride)
    raw_ref: (1, na, S, no)  raw conv output, already in the final layout
    dec_ref: (1, na, S, no)  decoded output, already in the final layout
    """
    x = x_ref[0]                                     # (C, S)
    # 1x1 conv == matmul contracting C with the LHS "transposed" (TN) so the
    # NCHW input never needs an HBM-side transpose.
    raw = lax.dot_general(x, w_ref[...], (((0,), (0,)), ((), ())),
                          preferred_element_type=jnp.float32)
    raw = raw + b_ref[...]                           # (S, N)

    a_col = cc_ref[0:1, :]                           # (1, N)
    b_col = cc_ref[1:2, :]
    sel_x = cc_ref[2:3, :]
    sel_y = cc_ref[3:4, :]
    gxs = g_ref[:, 0:1]                              # (S, 1)
    gys = g_ref[:, 1:2]

    # sigmoid: exp and the approximate reciprocal both run on the EUP slot.
    sig = pl.reciprocal(1.0 + jnp.exp(-raw), approx=True)

    # Fused decode (xy / wh / conf branches folded into per-column constants):
    #   xy  : (2*sig - 0.5 + g) * stride = sig*(2*stride) + (g-0.5)*stride
    #   wh  : (2*sig)^2 * anchor         = sig*sig*(4*anchor)
    #   conf:  sig                        = sig*1
    add = gxs * sel_x + gys * sel_y                  # (S, N)
    dec = sig * (a_col + sig * b_col) + add

    # Write per-anchor (S, no) column blocks straight into the final
    # (bs, na, ny*nx, no) layout -> no post-kernel transposes needed.
    for a in range(na):
        lo = a * no
        raw_ref[0, a] = raw[:, lo:lo + no]
        dec_ref[0, a] = dec[:, lo:lo + no]


def _column_constants(anchors_l, nc, na, stride):
    """(8, N) f32 table of per-output-column decode constants."""
    no = nc + 5
    N = na * no
    o = np.arange(N) % no
    cc = np.zeros((8, N), np.float32)
    cc[0] = np.where(o < 2, 2.0 * float(stride),     # xy scale
                     np.where(o >= 4, 1.0, 0.0))     # conf/class passthrough
    for a in range(na):
        cc[1, a * no + 2] = 4.0 * float(anchors_l[a][0])   # wh: 4*anchor_w
        cc[1, a * no + 3] = 4.0 * float(anchors_l[a][1])   # wh: 4*anchor_h
    cc[2] = (o == 0).astype(np.float32)              # selects gx column
    cc[3] = (o == 1).astype(np.float32)              # selects gy column
    return jnp.asarray(cc)


def _grid_table(ny, nx, stride):
    """(S, 2) f32 table of ((gx-0.5)*stride, (gy-0.5)*stride) per cell."""
    s = np.arange(ny * nx)
    gx = (s % nx).astype(np.float32)
    gy = (s // nx).astype(np.float32)
    tbl = np.stack([(gx - 0.5) * float(stride), (gy - 0.5) * float(stride)], 1)
    return jnp.asarray(tbl)


def yolo_head_level(x_nchw, w_cn, bias, col_const, grid_xy, *, no, na,
                    spatial_tile=None):
    """Run one detection level. x_nchw: (bs, C, ny, nx) float32."""
    bs, C, ny, nx = x_nchw.shape
    S = ny * nx
    N = na * no
    ts = S if spatial_tile is None else spatial_tile
    assert S % ts == 0, "spatial_tile must divide ny*nx"
    n_sp = S // ts

    x_cs = x_nchw.reshape(bs, C, S)   # free reshape of the contiguous NCHW tensor

    kernel = functools.partial(_yolo_level_kernel, no=no, na=na)

    raw, dec = pl.pallas_call(
        kernel,
        out_shape=(jax.ShapeDtypeStruct((bs, na, S, no), jnp.float32),
                   jax.ShapeDtypeStruct((bs, na, S, no), jnp.float32)),
        grid_spec=pltpu.PrefetchScalarGridSpec(
            num_scalar_prefetch=0,
            grid=(bs, n_sp),
            in_specs=[
                pl.BlockSpec((1, C, ts), lambda b, s: (b, 0, s)),   # activations
                pl.BlockSpec((C, N), lambda b, s: (0, 0)),          # weight
                pl.BlockSpec((1, N), lambda b, s: (0, 0)),          # bias
                pl.BlockSpec((8, N), lambda b, s: (0, 0)),          # column consts
                pl.BlockSpec((ts, 2), lambda b, s: (s, 0)),         # grid coords
            ],
            out_specs=[
                pl.BlockSpec((1, na, ts, no), lambda b, s: (b, 0, s, 0)),
                pl.BlockSpec((1, na, ts, no), lambda b, s: (b, 0, s, 0)),
            ],
        ),
        compiler_params=pltpu.CompilerParams(
            dimension_semantics=("parallel", "parallel")),
    )(x_cs, w_cn, bias.reshape(1, N), col_const, grid_xy)

    # Both outputs are already in (bs, na, ny*nx, no) order -> free reshapes.
    x_out = raw.reshape(bs, na, ny, nx, no)
    z = dec.reshape(bs, na * S, no)
    return x_out, z


def yolo_head_forward(xs, weights, biases, anchors, strides, *, nc, na,
                      spatial_tiles=None):
    """Full head: list of NCHW feature maps -> (z_cat, x_list)."""
    no = nc + 5
    x_outs, zs = [], []
    for i, x in enumerate(xs):
        _, _, ny, nx = x.shape
        st = None if spatial_tiles is None else spatial_tiles[i]
        xo, z = yolo_head_level(
            x, weights[i], biases[i],
            _column_constants(anchors[i], nc, na, strides[i]),
            _grid_table(ny, nx, strides[i]),
            no=no, na=na, spatial_tile=st)
        x_outs.append(xo)
        zs.append(z)
    return jnp.concatenate(zs, axis=1), x_outs


def reference_forward(xs, weights, biases, anchors, strides, *, nc, na):
    """Pure-JAX reference matching the PyTorch eval-mode forward."""
    no = nc + 5
    x_outs, zs = [], []
    for i, x in enumerate(xs):
        bs, C, ny, nx = x.shape
        out = jnp.einsum('bchw,cn->bnhw', x, weights[i],
                         precision=lax.Precision.HIGHEST) \
            + biases[i].reshape(1, -1, 1, 1)
        xp = out.reshape(bs, na, no, ny, nx).transpose(0, 1, 3, 4, 2)
        sig = 1.0 / (1.0 + jnp.exp(-xp))
        yv, xv = jnp.meshgrid(jnp.arange(ny), jnp.arange(nx), indexing='ij')
        grid = jnp.stack((xv, yv), 2).reshape(1, 1, ny, nx, 2).astype(jnp.float32)
        a_wh = jnp.asarray(anchors[i], jnp.float32).reshape(1, na, 1, 1, 2)
        xy = (sig[..., 0:2] * 2.0 - 0.5 + grid) * strides[i]
        wh = (sig[..., 2:4] * 2.0) ** 2 * a_wh
        y = jnp.concatenate([xy, wh, sig[..., 4:]], axis=-1)
        x_outs.append(xp)
        zs.append(y.reshape(bs, -1, no))
    return jnp.concatenate(zs, axis=1), x_outs


if __name__ == "__main__":
    # Small configuration consistent with the module.
    nc = 3
    na = 3
    no = nc + 5                       # 8
    N = na * no                       # 24 output channels per level
    ch = (16, 32, 64)                 # scaled-down input channels per level
    strides = [8.0, 16.0, 32.0]
    anchors = [[[10., 13.], [16., 30.], [33., 23.]],
               [[30., 61.], [62., 45.], [59., 119.]],
               [[116., 90.], [156., 198.], [373., 326.]]]
    bs = 2
    spatial = [(16, 16), (8, 8), (4, 4)]

    key = jax.random.PRNGKey(0)
    keys = jax.random.split(key, 3 * len(ch))
    xs, weights, biases = [], [], []
    for i, c in enumerate(ch):
        ny, nx = spatial[i]
        xs.append(jax.random.normal(keys[3 * i], (bs, c, ny, nx), jnp.float32))
        # Conv2d(c, N, 1): PyTorch weight (N, c, 1, 1) -> matmul form (c, N).
        weights.append(0.01 * jax.random.normal(keys[3 * i + 1], (c, N),
                                                jnp.float32))
        biases.append(0.01 * jax.random.normal(keys[3 * i + 2], (N,),
                                               jnp.float32))

    z, x_out = yolo_head_forward(xs, weights, biases, anchors, strides,
                                 nc=nc, na=na)
    jax.block_until_ready(z)
    for xo in x_out:
        jax.block_until_ready(xo)

    z_ref, x_ref = reference_forward(xs, weights, biases, anchors, strides,
                                     nc=nc, na=na)
    assert z.shape == z_ref.shape
    assert all(a.shape == b.shape for a, b in zip(x_out, x_ref))
    assert jnp.allclose(z, z_ref, rtol=1e-2, atol=1e-2)
    assert all(jnp.allclose(a, b, rtol=1e-2, atol=1e-2)
               for a, b in zip(x_out, x_ref))

    print("KERNEL_OK")
</pallas_src>

<mosaic_0001>
module attributes {stable_mosaic.version = 11 : i64} {
  func.func @_yolo_level_kernel(%arg0: i32, %arg1: i32, %arg2: memref<1x16x256xf32, #tpu.memory_space<vmem>>, %arg3: memref<16x24xf32, #tpu.memory_space<vmem>>, %arg4: memref<1x24xf32, #tpu.memory_space<vmem>>, %arg5: memref<8x24xf32, #tpu.memory_space<vmem>>, %arg6: memref<256x2xf32, #tpu.memory_space<vmem>>, %arg7: memref<1x3x256x8xf32, #tpu.memory_space<vmem>>, %arg8: memref<1x3x256x8xf32, #tpu.memory_space<vmem>>) attributes {dimension_semantics = [#tpu.dimension_semantics<parallel>, #tpu.dimension_semantics<parallel>], iteration_bounds = array<i64: 2, 1>, scalar_prefetch = 0 : i64, scratch_operands = 0 : i64, tpu.core_type = #tpu.core_type<tc>, window_params = [{transform_indices = @transform_0, window_bounds = array<i64: 1, 16, 256>}, {pipeline_mode = #tpu.pipeline_mode<synchronous>, transform_indices = @transform_1, window_bounds = array<i64: 16, 24>}, {pipeline_mode = #tpu.pipeline_mode<synchronous>, transform_indices = @transform_2, window_bounds = array<i64: 1, 24>}, {pipeline_mode = #tpu.pipeline_mode<synchronous>, transform_indices = @transform_3, window_bounds = array<i64: 8, 24>}, {transform_indices = @transform_4, window_bounds = array<i64: 256, 2>}, {transform_indices = @transform_5, window_bounds = array<i64: 1, 3, 256, 8>}, {transform_indices = @transform_6, window_bounds = array<i64: 1, 3, 256, 8>}]} {
    %c0 = arith.constant 0 : index
    %c0_0 = arith.constant 0 : index
    %c0_1 = arith.constant 0 : index
    %0 = vector.load %arg2[%c0, %c0_0, %c0_1] : memref<1x16x256xf32, #tpu.memory_space<vmem>>, vector<1x16x256xf32>
    %1 = vector.shape_cast %0 : vector<1x16x256xf32> to vector<16x256xf32>
    %c0_2 = arith.constant 0 : index
    %c0_3 = arith.constant 0 : index
    %2 = vector.load %arg3[%c0_2, %c0_3] : memref<16x24xf32, #tpu.memory_space<vmem>>, vector<16x24xf32>
    %cst = arith.constant dense<0.000000e+00> : vector<256x24xf32>
    %3 = tpu.matmul %1, %2, %cst {dimension_numbers = #tpu.dot_dimension_numbers<[0], [0], [1], [1], [0, 1, 1, 1], [], []>} : vector<16x256xf32>, vector<16x24xf32>, vector<256x24xf32> -> vector<256x24xf32>
    %c0_4 = arith.constant 0 : index
    %c0_5 = arith.constant 0 : index
    %4 = vector.load %arg4[%c0_4, %c0_5] : memref<1x24xf32, #tpu.memory_space<vmem>>, vector<1x24xf32>
    %5 = vector.broadcast %4 : vector<1x24xf32> to vector<256x24xf32>
    %6 = arith.addf %3, %5 : vector<256x24xf32>
    %c0_6 = arith.constant 0 : index
    %c0_7 = arith.constant 0 : index
    %7 = vector.load %arg5[%c0_6, %c0_7] : memref<8x24xf32, #tpu.memory_space<vmem>>, vector<1x24xf32>
    %c1 = arith.constant 1 : index
    %c0_8 = arith.constant 0 : index
    %8 = vector.load %arg5[%c1, %c0_8] : memref<8x24xf32, #tpu.memory_space<vmem>>, vector<1x24xf32>
    %c2 = arith.constant 2 : index
    %c0_9 = arith.constant 0 : index
    %9 = vector.load %arg5[%c2, %c0_9] : memref<8x24xf32, #tpu.memory_space<vmem>>, vector<1x24xf32>
    %c3 = arith.constant 3 : index
    %c0_10 = arith.constant 0 : index
    %10 = vector.load %arg5[%c3, %c0_10] : memref<8x24xf32, #tpu.memory_space<vmem>>, vector<1x24xf32>
    %c0_11 = arith.constant 0 : index
    %c0_12 = arith.constant 0 : index
    %11 = vector.load %arg6[%c0_11, %c0_12] : memref<256x2xf32, #tpu.memory_space<vmem>>, vector<256x1xf32>
    %c0_13 = arith.constant 0 : index
    %c1_14 = arith.constant 1 : index
    %12 = vector.load %arg6[%c0_13, %c1_14] : memref<256x2xf32, #tpu.memory_space<vmem>>, vector<256x1xf32>
    %cst_15 = arith.constant 0.000000e+00 : f32
    %13 = vector.broadcast %cst_15 : f32 to vector<256x24xf32>
    %14 = arith.subf %13, %6 : vector<256x24xf32>
    %15 = math.exp %14 : vector<256x24xf32>
    %cst_16 = arith.constant 1.000000e+00 : f32
    %16 = vector.broadcast %cst_16 : f32 to vector<256x24xf32>
    %17 = arith.addf %16, %15 : vector<256x24xf32>
    %18 = tpu.reciprocal %17 {approx = true} : vector<256x24xf32> -> vector<256x24xf32>
    %19 = vector.broadcast %11 : vector<256x1xf32> to vector<256x24xf32>
    %20 = vector.broadcast %9 : vector<1x24xf32> to vector<256x24xf32>
    %21 = arith.mulf %19, %20 : vector<256x24xf32>
    %22 = vector.broadcast %12 : vector<256x1xf32> to vector<256x24xf32>
    %23 = vector.broadcast %10 : vector<1x24xf32> to vector<256x24xf32>
    %24 = arith.mulf %22, %23 : vector<256x24xf32>
    %25 = arith.addf %21, %24 : vector<256x24xf32>
    %26 = vector.broadcast %8 : vector<1x24xf32> to vector<256x24xf32>
    %27 = arith.mulf %18, %26 : vector<256x24xf32>
    %28 = vector.broadcast %7 : vector<1x24xf32> to vector<256x24xf32>
    %29 = arith.addf %28, %27 : vector<256x24xf32>
    %30 = arith.mulf %18, %29 : vector<256x24xf32>
    %31 = arith.addf %30, %25 : vector<256x24xf32>
    %32 = vector.extract_strided_slice %6 {offsets = [0, 0], sizes = [256, 8], strides = [1, 1]} : vector<256x24xf32> to vector<256x8xf32>
    %c0_17 = arith.constant 0 : index
    %c0_18 = arith.constant 0 : index
    %c0_19 = arith.constant 0 : index
    %c0_20 = arith.constant 0 : index
    %33 = vector.load %arg7[%c0_17, %c0_18, %c0_19, %c0_20] : memref<1x3x256x8xf32, #tpu.memory_space<vmem>>, vector<1x1x256x8xf32>
    %34 = vector.shape_cast %33 : vector<1x1x256x8xf32> to vector<256x8xf32>
    %35 = vector.shape_cast %32 : vector<256x8xf32> to vector<1x1x256x8xf32>
    tpu.vector_store %arg7[%c0_17, %c0_18, %c0_19, %c0_20], %35 {strides = array<i32>} : memref<1x3x256x8xf32, #tpu.memory_space<vmem>>, vector<1x1x256x8xf32>,
    %36 = vector.extract_strided_slice %31 {offsets = [0, 0], sizes = [256, 8], strides = [1, 1]} : vector<256x24xf32> to vector<256x8xf32>
    %c0_21 = arith.constant 0 : index
    %c0_22 = arith.constant 0 : index
    %c0_23 = arith.constant 0 : index
    %c0_24 = arith.constant 0 : index
    %37 = vector.load %arg8[%c0_21, %c0_22, %c0_23, %c0_24] : memref<1x3x256x8xf32, #tpu.memory_space<vmem>>, vector<1x1x256x8xf32>
    %38 = vector.shape_cast %37 : vector<1x1x256x8xf32> to vector<256x8xf32>
    %39 = vector.shape_cast %36 : vector<256x8xf32> to vector<1x1x256x8xf32>
    tpu.vector_store %arg8[%c0_21, %c0_22, %c0_23, %c0_24], %39 {strides = array<i32>} : memref<1x3x256x8xf32, #tpu.memory_space<vmem>>, vector<1x1x256x8xf32>,
    %40 = vector.extract_strided_slice %6 {offsets = [0, 8], sizes = [256, 8], strides = [1, 1]} : vector<256x24xf32> to vector<256x8xf32>
    %c0_25 = arith.constant 0 : index
    %c1_26 = arith.constant 1 : index
    %c0_27 = arith.constant 0 : index
    %c0_28 = arith.constant 0 : index
    %41 = vector.load %arg7[%c0_25, %c1_26, %c0_27, %c0_28] : memref<1x3x256x8xf32, #tpu.memory_space<vmem>>, vector<1x1x256x8xf32>
    %42 = vector.shape_cast %41 : vector<1x1x256x8xf32> to vector<256x8xf32>
    %43 = vector.shape_cast %40 : vector<256x8xf32> to vector<1x1x256x8xf32>
    tpu.vector_store %arg7[%c0_25, %c1_26, %c0_27, %c0_28], %43 {strides = array<i32>} : memref<1x3x256x8xf32, #tpu.memory_space<vmem>>, vector<1x1x256x8xf32>,
    %44 = vector.extract_strided_slice %31 {offsets = [0, 8], sizes = [256, 8], strides = [1, 1]} : vector<256x24xf32> to vector<256x8xf32>
    %c0_29 = arith.constant 0 : index
    %c1_30 = arith.constant 1 : index
    %c0_31 = arith.constant 0 : index
    %c0_32 = arith.constant 0 : index
    %45 = vector.load %arg8[%c0_29, %c1_30, %c0_31, %c0_32] : memref<1x3x256x8xf32, #tpu.memory_space<vmem>>, vector<1x1x256x8xf32>
    %46 = vector.shape_cast %45 : vector<1x1x256x8xf32> to vector<256x8xf32>
    %47 = vector.shape_cast %44 : vector<256x8xf32> to vector<1x1x256x8xf32>
    tpu.vector_store %arg8[%c0_29, %c1_30, %c0_31, %c0_32], %47 {strides = array<i32>} : memref<1x3x256x8xf32, #tpu.memory_space<vmem>>, vector<1x1x256x8xf32>,
    %48 = vector.extract_strided_slice %6 {offsets = [0, 16], sizes = [256, 8], strides = [1, 1]} : vector<256x24xf32> to vector<256x8xf32>
    %c0_33 = arith.constant 0 : index
    %c2_34 = arith.constant 2 : index
    %c0_35 = arith.constant 0 : index
    %c0_36 = arith.constant 0 : index
    %49 = vector.load %arg7[%c0_33, %c2_34, %c0_35, %c0_36] : memref<1x3x256x8xf32, #tpu.memory_space<vmem>>, vector<1x1x256x8xf32>
    %50 = vector.shape_cast %49 : vector<1x1x256x8xf32> to vector<256x8xf32>
    %51 = vector.shape_cast %48 : vector<256x8xf32> to vector<1x1x256x8xf32>
    tpu.vector_store %arg7[%c0_33, %c2_34, %c0_35, %c0_36], %51 {strides = array<i32>} : memref<1x3x256x8xf32, #tpu.memory_space<vmem>>, vector<1x1x256x8xf32>,
    %52 = vector.extract_strided_slice %31 {offsets = [0, 16], sizes = [256, 8], strides = [1, 1]} : vector<256x24xf32> to vector<256x8xf32>
    %c0_37 = arith.constant 0 : index
    %c2_38 = arith.constant 2 : index
    %c0_39 = arith.constant 0 : index
    %c0_40 = arith.constant 0 : index
    %53 = vector.load %arg8[%c0_37, %c2_38, %c0_39, %c0_40] : memref<1x3x256x8xf32, #tpu.memory_space<vmem>>, vector<1x1x256x8xf32>
    %54 = vector.shape_cast %53 : vector<1x1x256x8xf32> to vector<256x8xf32>
    %55 = vector.shape_cast %52 : vector<256x8xf32> to vector<1x1x256x8xf32>
    tpu.vector_store %arg8[%c0_37, %c2_38, %c0_39, %c0_40], %55 {strides = array<i32>} : memref<1x3x256x8xf32, #tpu.memory_space<vmem>>, vector<1x1x256x8xf32>,
    return
  }
  func.func @transform_0(%arg0: i32, %arg1: i32) -> (i32, i32, i32) {
    %c0_i32 = arith.constant 0 : i32
    %c0_i32_0 = arith.constant 0 : i32
    return %arg0, %c0_i32, %arg1 : i32, i32, i32
  }
  func.func @transform_1(%arg0: i32, %arg1: i32) -> (i32, i32) {
    %c0_i32 = arith.constant 0 : i32
    %c0_i32_0 = arith.constant 0 : i32
    %c0_i32_1 = arith.constant 0 : i32
    return %c0_i32, %c0_i32_0 : i32, i32
  }
  func.func @transform_2(%arg0: i32, %arg1: i32) -> (i32, i32) {
    %c0_i32 = arith.constant 0 : i32
    %c0_i32_0 = arith.constant 0 : i32
    %c0_i32_1 = arith.constant 0 : i32
    return %c0_i32, %c0_i32_0 : i32, i32
  }
  func.func @transform_3(%arg0: i32, %arg1: i32) -> (i32, i32) {
    %c0_i32 = arith.constant 0 : i32
    %c0_i32_0 = arith.constant 0 : i32
    %c0_i32_1 = arith.constant 0 : i32
    return %c0_i32, %c0_i32_0 : i32, i32
  }
  func.func @transform_4(%arg0: i32, %arg1: i32) -> (i32, i32) {
    %c0_i32 = arith.constant 0 : i32
    %c0_i32_0 = arith.constant 0 : i32
    return %arg1, %c0_i32 : i32, i32
  }
  func.func @transform_5(%arg0: i32, %arg1: i32) -> (i32, i32, i32, i32) {
    %c0_i32 = arith.constant 0 : i32
    %c0_i32_0 = arith.constant 0 : i32
    %c0_i32_1 = arith.constant 0 : i32
    return %arg0, %c0_i32, %arg1, %c0_i32_0 : i32, i32, i32, i32
  }
  func.func @transform_6(%arg0: i32, %arg1: i32) -> (i32, i32, i32, i32) {
    %c0_i32 = arith.constant 0 : i32
    %c0_i32_0 = arith.constant 0 : i32
    %c0_i32_1 = arith.constant 0 : i32
    return %arg0, %c0_i32, %arg1, %c0_i32_0 : i32, i32, i32, i32
  }
}

</mosaic_0001>

<bundles_post_ra>
// kernel: tpu_custom_call.1
= control target key start
LH: loop header
LB: loop body
LE: loop exit
PB: predicated region body
PF: predicated region fallthrough
CT: control target
= control target key end

     0   :  { %s2546_s21 = smov 0   ;;  %s2548_s22 = smov 0   ;;  %s4142_s0 = inlined_call_operand.vmem [shape: f32[2,16,256], index: 0, kind: input, shape index: {}]   ;;  %s4143_s1 = inlined_call_operand.vmem [shape: f32[16,24], index: 1, kind: input, shape index: {}]   ;;  %s4144_s2 = inlined_call_operand.vmem [shape: f32[1,24], index: 2, kind: input, shape index: {}]   ;;  %s4145_s3 = inlined_call_operand.vmem [shape: f32[8,24], index: 3, kind: input, shape index: {}]   ;;  %s4146_s4 = inlined_call_operand.vmem [shape: f32[256,2], index: 4, kind: input, shape index: {}]   ;;  %s4147_s5 = inlined_call_operand.vmem [shape: f32[2,3,256,8], index: 5, kind: output, shape index: {0}]   ;;  %s4148_s6 = inlined_call_operand.vmem [shape: f32[2,3,256,8], index: 6, kind: output, shape index: {1}]  }
   0x1   :  { %s2550_s23 = smov 0  }
   0x2 LB: > { %s29_s24 = sadd.s32 1, %s2501_s22  ;;  %p2135_p0 = scmp.ge.s32.totalorder %s2505_s23, 1  ;;  %s2505_s23 = sphi %s2550_s23, %s17_s23   ;;  %s2501_s22 = sphi %s2548_s22, %s4256_s22   ;;  %s2497_s21 = sphi %s2546_s21, %s4255_s21  }
   0x3   : > { %p31_p1 = scmp.ge.s32.totalorder %s29_s24, 2  ;;  %p249_p2 = scmp.lt.s32.totalorder %s2505_s23, 3 }
   0x5   : > { %s4258_s24 = smov (%p31_p1, %s29_s24), 0  ;;  %p250_p3 = pnand %p2135_p0, %p249_p2 }
   0x7   : > { %253 = sbr.rel (%p250_p3) target bundleno = 845 (0x34d), region = 40 }
   0xc   : > { %v2567_v0 = vld [vmem:[%s4146_s4] sm:$0xff]  ;;  %p302_p4 = scmp.lt.s32.totalorder %s2497_s21, 1  ;;  %v2507_v1 = vmov 0   ;;  %v2579_v4 = vld [vmem:[%s4146_s4 + $0x8] sm:$0xff]  ;;  %v2597_v9 = vld [vmem:[%s4146_s4 + $0x30] sm:$0xff]  ;;  %vm411_vm0 = vcmask 130048  }
   0xd   : > { %2339 = vset.pattern.permute.xlu2 %v2507_v1  ;;  %v2585_v7 = vld [vmem:[%s4146_s4 + $0x20] sm:$0xff]  ;;  %v2591_v8 = vld [vmem:[%s4146_s4 + $0x28] sm:$0xff]  ;;  %v2603_v10 = vld [vmem:[%s4146_s4 + $0x38] sm:$0xff]  ;;  %vm1333_vm1 = vcmask 64512   ;;  %s2509_s19 = smov 120   ;;  %s2510_s26 = smov 112  }
   0xe   : > { %819 = vperm.xlu2 %2339, %v2567_v0   ;;  %s4260_s21 = smov (!%p302_p4, %s2497_s21), 1  ;;  %v2609_v11 = vld [vmem:[%s4146_s4 + $0x40] sm:$0xff]  ;;  %v2615_v12 = vld [vmem:[%s4146_s4 + $0x48] sm:$0xff]  ;;  %v2621_v13 = vld [vmem:[%s4146_s4 + $0x50] sm:$0xff] }
   0xf   : > { %s2302_s27 = sshll.u32 %s4260_s21, 5  ;;  %v2627_v14 = vld [vmem:[%s4146_s4 + $0x58] sm:$0xff]  ;;  %v2633_v15 = vld [vmem:[%s4146_s4 + $0x60] sm:$0xff]  ;;  %v2639_v16 = vld [vmem:[%s4146_s4 + $0x68] sm:$0xff]  ;;  %s2309_s13 = smul.u32 768, %s4260_s21 }
  0x10   : > { %s309_s30 = scalar_lea.vmem %s4142_s0, %s2302_s27  ;;  %v2647_v18 = vld [vmem:[%s4146_s4 + $0x70] sm:$0xff]  ;;  %v2655_v20 = vld [vmem:[%s4146_s4 + $0x78] sm:$0xff]  ;;  %v2663_v22 = vld [vmem:[%s4146_s4 + $0x80] sm:$0xff] }
  0x11   : > { %v338_v2 = vld [vmem:[%s309_s30 + $0x8] sm:$0xff]  ;;  %v337_v3 = vld [vmem:[%s309_s30] sm:$0xff]  ;;  %v340_v5 = vld [vmem:[%s309_s30 + $0x18] sm:$0xff]  ;;  %s2878_s18 = scalar_lea.vmem %s4147_s5, %s2309_s13  ;;  %s2996_s10 = scalar_lea.vmem %s4148_s6, %s2309_s13 }
  0x12   : > { %379 = vxpose.xlu1.b32.start [1/2] (short) %v338_v2, 128  ;;  %347 = vxpose.xlu0.b32.start [1/2] (short) %v337_v3, 128  ;;  %v339_v6 = vld [vmem:[%s309_s30 + $0x10] sm:$0xff]  ;;  %v2671_v24 = vld [vmem:[%s4146_s4 + $0x88] sm:$0xff]  ;;  %v2690_v29 = vld [vmem:[%s4146_s4 + $0x98] sm:$0xff] }
  0x13   : > { %v2679_v26 = vld [vmem:[%s4146_s4 + $0x90] sm:$0xff]  ;;  %v342_v28 = vld [vmem:[%s4143_s1 + $0x8] sm:$0xff]  ;;  %v341_v30 = vld [vmem:[%s4143_s1] sm:$0xff] }
  0x14   : > { %522 = vmatpush.msra.mxu0 %v342_v28  ;;  %2304 = vmatpush.msra.mxu2 %v342_v28  ;;  %v2701_v32 = vld [vmem:[%s4146_s4 + $0xa0] sm:$0xff]  ;;  %v2709_v34 = vld [vmem:[%s4146_s4 + $0xa8] sm:$0xff]  ;;  %v2717_v36 = vld [vmem:[%s4146_s4 + $0xb0] sm:$0xff] }
  0x15   : > { %2303 = vmatpush.msra.mxu1 %v342_v28  ;;  %2305 = vmatpush.msra.mxu3 %v342_v28  ;;  %v2725_v38 = vld [vmem:[%s4146_s4 + $0xb8] sm:$0xff]  ;;  %v2735_v42 = vld [vmem:[%s4146_s4 + $0xc0] sm:$0xff]  ;;  %v2745_v46 = vld [vmem:[%s4146_s4 + $0xc8] sm:$0xff] }
  0x16   : > { %824 = vperm.xlu2 %2339, %v2579_v4   ;;  %523 = vmatpush.msra.mxu0 %v341_v30  ;;  %v2755_v50 = vld [vmem:[%s4146_s4 + $0xd0] sm:$0xff]  ;;  %v2765_v54 = vld [vmem:[%s4146_s4 + $0xd8] sm:$0xff]  ;;  %v2775_v58 = vld [vmem:[%s4146_s4 + $0xe0] sm:$0xff] }
  0x17   : > { %2307 = vmatpush.msra.mxu2 %v341_v30  ;;  %2306 = vmatpush.msra.mxu1 %v341_v30  ;;  %v628_v62 = vld [vmem:[%s4146_s4 + $0x18] sm:$0xff]  ;;  %v2788_v63 = vld [vmem:[%s4146_s4 + $0xe8] sm:$0xff] }
  0x18   : > { %2308 = vmatpush.msra.mxu3 %v341_v30 }
  0x1a   : > { %380 = vxpose.xlu1.b32.end [2/2] (short) %v340_v5, 128  ;;  %348 = vxpose.xlu0.b32.end [2/2] (short) %v339_v6, 128  ;;  %v2798_v5 = vld [vmem:[%s4146_s4 + $0xf0] sm:$0xff]  ;;  %v2803_v6 = vld [vmem:[%s4146_s4 + $0xf8] sm:$0xff] }
  0x1e   : > { %839 = vperm.xlu2 %2339, %v2585_v7  }
  0x26   : > { %844 = vperm.xlu2 %2339, %v2591_v8  }
  0x2e   : > { %849 = vperm.xlu2 %2339, %v2597_v9  }
  0x36   : > { %854 = vperm.xlu2 %2339, %v2603_v10  }
  0x3e   : > { %859 = vperm.xlu2 %2339, %v2609_v11  }
  0x46   : > { %864 = vperm.xlu2 %2339, %v2615_v12  }
  0x4e   : > { %869 = vperm.xlu2 %2339, %v2621_v13  }
  0x56   : > { %874 = vperm.xlu2 %2339, %v2627_v14  }
  0x5e   : > { %879 = vperm.xlu2 %2339, %v2633_v15  }
  0x66   : > { %884 = vperm.xlu2 %2339, %v2639_v16  }
  0x68   : > { %v2642_v17 = vpop.permute.xlu2 %819 }
  0x6d   : > { %2341 = vset.pattern.permute.xlu1 %v2507_v1 }
  0x6e   : > { %889 = vperm.xlu2 %2339, %v2647_v18  }
  0x70   : > { %v2650_v19 = vpop.permute.xlu2 %824 }
  0x76   : > { %894 = vperm.xlu2 %2339, %v2655_v20  }
  0x78   : > { %v2658_v21 = vpop.permute.xlu2 %839 }
  0x7e   : > { %899 = vperm.xlu2 %2339, %v2663_v22  }
  0x80   : > { %v2666_v23 = vpop.permute.xlu2 %844 }
  0x81   : > { %2340 = vset.pattern.permute.xlu0 %v2507_v1 }
  0x86   : > { %904 = vperm.xlu2 %2339, %v2671_v24  }
  0x88   : > { %v2674_v25 = vpop.permute.xlu2 %849 }
  0x8e   : > { %909 = vperm.xlu2 %2339, %v2679_v26  }
  0x90   : > { %v2682_v27 = vpop.permute.xlu2 %854 }
  0x96   : > { %914 = vperm.xlu2 %2339, %v2690_v29  }
  0x98   : > { %v2696_v31 = vpop.permute.xlu2 %859 }
  0x9e   : > { %919 = vperm.xlu2 %2339, %v2701_v32  }
  0xa0   : > { %v2704_v33 = vpop.permute.xlu2 %864 }
  0xa6   : > { %924 = vperm.xlu2 %2339, %v2709_v34  }
  0xa8   : > { %v2712_v35 = vpop.permute.xlu2 %869 }
  0xae   : > { %929 = vperm.xlu2 %2339, %v2717_v36  }
  0xb0   : > { %v2720_v37 = vpop.permute.xlu2 %874 }
  0xb6   : > { %934 = vperm.xlu2 %2339, %v2725_v38   ;;  %v395_v39 = vpop.trf.xlu1  ;;  %v363_v40 = vpop.trf.xlu0 }
  0xb7   : > { %2140 = vmatmul.msk.f32.vlgmr.msra.gmra.mxu0 %vm411_vm0, %v363_v40  ;;  %2156 = vmatmul.msk.f32.vlgmr.msra.gmra.mxu2 %vm411_vm0, %v395_v39  ;;  %v2508_v40 = vmov 1  }
  0xb8   : > { %v2728_v41 = vpop.permute.xlu2 %879 }
  0xbe   : > { %939 = vperm.xlu2 %2339, %v2735_v42   ;;  %v396_v43 = vpop.trf.xlu1  ;;  %v364_v44 = vpop.trf.xlu0 }
  0xbf   : > { %2141 = vmatmul.msk.f32.gmra.mxu0 %vm411_vm0, %v364_v44  ;;  %2157 = vmatmul.msk.f32.gmra.mxu2 %vm411_vm0, %v396_v43  ;;  %v627_v43 = vld [vmem:[%s4146_s4 + $0x10] sm:$0xff] }
  0xc0   : > { %v2738_v45 = vpop.permute.xlu2 %884 }
  0xc6   : > { %944 = vperm.xlu2 %2339, %v2745_v46   ;;  %v397_v47 = vpop.trf.xlu1  ;;  %v365_v48 = vpop.trf.xlu0 }
  0xc7   : > { %2142 = vmatmul.msk.f32.gmra.mxu0 %vm411_vm0, %v365_v48  ;;  %2158 = vmatmul.msk.f32.gmra.mxu2 %vm411_vm0, %v397_v47 }
  0xc8   : > { %v2748_v49 = vpop.permute.xlu2 %889 }
  0xce   : > { %949 = vperm.xlu2 %2339, %v2755_v50   ;;  %v398_v51 = vpop.trf.xlu1  ;;  %v366_v52 = vpop.trf.xlu0 }
  0xcf   : > { %2143 = vmatmul.msk.f32.gmra.mxu0 %vm411_vm0, %v366_v52  ;;  %2159 = vmatmul.msk.f32.gmra.mxu2 %vm411_vm0, %v398_v51 }
  0xd0   : > { %v2758_v53 = vpop.permute.xlu2 %894 }
  0xd1   : > { %4191 = vst [vmem:[#allocation2_spill] sm:$0xff] %v2758_v53 }
  0xd6   : > { %954 = vperm.xlu2 %2339, %v2765_v54   ;;  %v399_v55 = vpop.trf.xlu1  ;;  %v367_v56 = vpop.trf.xlu0 }
  0xd7   : > { %2144 = vmatmul.msk.f32.gmra.mxu0 %vm411_vm0, %v367_v56  ;;  %2160 = vmatmul.msk.f32.gmra.mxu2 %vm411_vm0, %v399_v55 }
  0xd8   : > { %v2768_v57 = vpop.permute.xlu2 %899 }
  0xde   : > { %959 = vperm.xlu2 %2339, %v2775_v58   ;;  %v400_v59 = vpop.trf.xlu1  ;;  %v368_v60 = vpop.trf.xlu0 }
  0xdf   : > { %2145 = vmatmul.msk.f32.gmra.mxu0 %vm411_vm0, %v368_v60  ;;  %2161 = vmatmul.msk.f32.gmra.mxu2 %vm411_vm0, %v400_v59 }
  0xe0   : > { %v2778_v61 = vpop.permute.xlu2 %904 }
  0xe4   : > { %834 = vperm.xlu1 %2341, %v628_v62  }
  0xe6   : > { %964 = vperm.xlu2 %2339, %v2788_v63   ;;  %v401_v1 = vpop.trf.xlu1  ;;  %v369_v2 = vpop.trf.xlu0 }
  0xe7   : > { %2146 = vmatmul.msk.f32.gmra.mxu0 %vm411_vm0, %v369_v2  ;;  %2162 = vmatmul.msk.f32.gmra.mxu2 %vm411_vm0, %v401_v1 }
  0xe8   : > { %v2791_v3 = vpop.permute.xlu2 %909 }
  0xec   : > { %969 = vperm.xlu1 %2341, %v2798_v5  }
  0xee   : > { %974 = vperm.xlu2 %2339, %v2803_v6   ;;  %v402_v28 = vpop.trf.xlu1  ;;  %v370_v30 = vpop.trf.xlu0 }
  0xef   : > { %2147 = vmatmul.msk.f32.gmra.mxu0 %vm411_vm0, %v370_v30  ;;  %2163 = vmatmul.msk.f32.gmra.mxu2 %vm411_vm0, %v402_v28 }
  0xf0   : > { %v2807_v39 = vpop.permute.xlu2 %914 }
  0xf4   : > { %2342 = vset.pattern.permute.xlu1 %v2508_v40 }
  0xf5   : > { %1011 = vperm.xlu1 %2342, %v2567_v0  }
  0xf6   : > { %2343 = vset.pattern.permute.xlu2 %v2508_v40  ;;  %v403_v44 = vpop.trf.xlu1  ;;  %v371_v47 = vpop.trf.xlu0 }
  0xf7   : > { %1015 = vperm.xlu2 %2343, %v2579_v4   ;;  %2164 = vmatmul.msk.f32.vlgmr.msra.gmra.mxu3 %vm411_vm0, %v403_v44 }
  0xf8   : > { %v2816_v48 = vpop.permute.xlu2 %919  ;;  %2148 = vmatmul.msk.f32.vlgmr.msra.gmra.mxu1 %vm411_vm0, %v371_v47  ;;  %829 = vperm.xlu0 %2340, %v627_v43  }
  0xfd   : > { %1019 = vperm.xlu1 %2342, %v627_v43  }
  0xfe   : > { %v404_v51 = vpop.trf.xlu1  ;;  %v372_v0 = vpop.trf.xlu0 }
  0xff   : > { %1027 = vperm.xlu2 %2343, %v2585_v7   ;;  %2165 = vmatmul.msk.f32.gmra.mxu3 %vm411_vm0, %v404_v51 }
 0x100   : > { %v2821_v52 = vpop.permute.xlu2 %924  ;;  %2149 = vmatmul.msk.f32.gmra.mxu1 %vm411_vm0, %v372_v0  ;;  %2344 = vset.pattern.permute.xlu0 %v2508_v40 }
 0x101   : > { %1023 = vperm.xlu0 %2344, %v628_v62  }
 0x105   : > { %1031 = vperm.xlu1 %2342, %v2591_v8  }
 0x106   : > { %v405_v4 = vpop.trf.xlu1  ;;  %v373_v55 = vpop.trf.xlu0 }
 0x107   : > { %1035 = vperm.xlu2 %2343, %v2597_v9   ;;  %2166 = vmatmul.msk.f32.gmra.mxu3 %vm411_vm0, %v405_v4  ;;  %v2947_v4 = vld [vmem:[%s4145_s3 + $0x3] ss:$0 sm:$0xff] }
 0x108   : > { %v2827_v56 = vpop.permute.xlu2 %929  ;;  %2150 = vmatmul.msk.f32.gmra.mxu1 %vm411_vm0, %v373_v55 }
 0x109   : > { %1043 = vperm.xlu0 %2344, %v2609_v11  }
 0x10d   : > { %1039 = vperm.xlu1 %2342, %v2603_v10  }
 0x10e   : > { %v406_v7 = vpop.trf.xlu1  ;;  %v374_v59 = vpop.trf.xlu0 }
 0x10f   : > { %1047 = vperm.xlu2 %2343, %v2615_v12   ;;  %2167 = vmatmul.msk.f32.gmra.mxu3 %vm411_vm0, %v406_v7 }
 0x110   : > { %v2834_v60 = vpop.permute.xlu2 %934  ;;  %2151 = vmatmul.msk.f32.gmra.mxu1 %vm411_vm0, %v374_v59 }
 0x111   : > { %1055 = vperm.xlu0 %2344, %v2627_v14  }
 0x115   : > { %1051 = vperm.xlu1 %2342, %v2621_v13  }
 0x116   : > { %v407_v8 = vpop.trf.xlu1  ;;  %v375_v9 = vpop.trf.xlu0 }
 0x117   : > { %1059 = vperm.xlu2 %2343, %v2633_v15   ;;  %2168 = vmatmul.msk.f32.gmra.mxu3 %vm411_vm0, %v407_v8 }
 0x118   : > { %v2841_v11 = vpop.permute.xlu2 %939  ;;  %2152 = vmatmul.msk.f32.gmra.mxu1 %vm411_vm0, %v375_v9  ;;  %v2960_v9 = vld [vmem:[%s4145_s3 + $0x1] ss:$0 sm:$0xff] }
 0x119   : > { %1067 = vperm.xlu0 %2344, %v2647_v18  }
 0x11d   : > { %1063 = vperm.xlu1 %2342, %v2639_v16  }
 0x11e   : > { %v408_v10 = vpop.trf.xlu1  ;;  %v376_v12 = vpop.trf.xlu0 }
 0x11f   : > { %1071 = vperm.xlu2 %2343, %v2655_v20   ;;  %2169 = vmatmul.msk.f32.gmra.mxu3 %vm411_vm0, %v408_v10 }
 0x120   : > { %v2848_v14 = vpop.permute.xlu2 %944  ;;  %2153 = vmatmul.msk.f32.gmra.mxu1 %vm411_vm0, %v376_v12 }
 0x121   : > { %1079 = vperm.xlu0 %2344, %v2671_v24   ;;  %v2871_v24 = vld [vmem:[%s4144_s2] ss:$0 sm:$0xff] }
 0x125   : > { %1075 = vperm.xlu1 %2342, %v2663_v22  }
 0x126   : > { %v409_v13 = vpop.trf.xlu1  ;;  %v377_v15 = vpop.trf.xlu0 }
 0x127   : > { %1083 = vperm.xlu2 %2343, %v2679_v26   ;;  %2170 = vmatmul.msk.f32.gmra.mxu3 %vm411_vm0, %v409_v13 }
 0x128   : > { %v2855_v16 = vpop.permute.xlu2 %949  ;;  %2154 = vmatmul.msk.f32.gmra.mxu1 %vm411_vm0, %v377_v15 }
 0x129   : > { %1091 = vperm.xlu0 %2344, %v2701_v32  }
 0x12d   : > { %1087 = vperm.xlu1 %2342, %v2690_v29  }
 0x12e   : > { %v410_v18 = vpop.trf.xlu1  ;;  %v378_v20 = vpop.trf.xlu0 }
 0x12f   : > { %1095 = vperm.xlu2 %2343, %v2709_v34   ;;  %2171 = vmatmul.msk.f32.gmra.mxu3 %vm411_vm0, %v410_v18 }
 0x130   : > { %v2862_v22 = vpop.permute.xlu2 %954  ;;  %2155 = vmatmul.msk.f32.gmra.mxu1 %vm411_vm0, %v378_v20  ;;  %v2969_v20 = vld [vmem:[%s4145_s3] ss:$0 sm:$0xff] }
 0x131   : > { %1103 = vperm.xlu0 %2344, %v2725_v38  }
 0x134   : > { %v525_v26 = vpop.f32.mrf.mxu0 }
 0x135   : > { %v2881_v29 = vadd.f32 %v2871_v24, %v525_v26  ;;  %1099 = vperm.xlu1 %2342, %v2717_v36  }
 0x137   : > { %4192 = vst [vmem:[#allocation3_spill] sm:$0xff] %v2881_v29  ;;  %1107 = vperm.xlu2 %2343, %v2735_v42   ;;  %v657_v2 = vsub.f32 0.0, %v2881_v29 }
 0x138   : > { %1334 = vst.msk [vmem:[%s2878_s18] sm:$0xff] %vm1333_vm1, %v2881_v29  ;;  %v2888_v32 = vpop.permute.xlu2 %959 }
 0x139   : > { %1115 = vperm.xlu0 %2344, %v2755_v50   ;;  %v689_v40 = vmul.f32 1.442695, %v657_v2 }
 0x13a   : > { %v573_v34 = vpop.f32.mrf.mxu2 }
 0x13b   : > { %v2892_v38 = vadd.f32 %v2871_v24, %v573_v34 }
 0x13c   : > { %v528_v62 = vpop.f32.mrf.mxu0 }
 0x13d   : > { %v2895_v1 = vadd.f32 %v2871_v24, %v528_v62  ;;  %1111 = vperm.xlu1 %2342, %v2745_v46   ;;  %1350 = vst.msk [vmem:[%s2878_s18 + $0x80] sm:$0xff] %vm1333_vm1, %v2892_v38 }
 0x13f   : > { %4193 = vst [vmem:[#allocation4_spill] sm:$0xff] %v2895_v1  ;;  %1119 = vperm.xlu2 %2343, %v2765_v54   ;;  %v658_v36 = vsub.f32 0.0, %v2895_v1 }
 0x140   : > { %1335 = vst.msk [vmem:[%s2878_s18 + $0x8] sm:$0xff] %vm1333_vm1, %v2895_v1  ;;  %v2906_v42 = vpop.permute.xlu2 %964 }
 0x141   : > { %v691_v50 = vmul.f32 1.442695, %v658_v36  ;;  %1127 = vperm.xlu0 %2344, %v2788_v63  }
 0x142   : > { %v576_v28 = vpop.f32.mrf.mxu2 }
 0x143   : > { %2350 = vpow2.f32 %v691_v50  ;;  %v2911_v46 = vadd.f32 %v2871_v24, %v576_v28 }
 0x144   : > { %v531_v30 = vpop.f32.mrf.mxu0  ;;  %2352 = vpow2.f32 %v689_v40 }
 0x145   : > { %v2914_v54 = vadd.f32 %v2871_v24, %v531_v30  ;;  %1123 = vperm.xlu1 %2342, %v2775_v58   ;;  %1351 = vst.msk [vmem:[%s2878_s18 + $0x88] sm:$0xff] %vm1333_vm1, %v2911_v46 }
 0x147   : > { %4194 = vst [vmem:[#allocation5_spill] sm:$0xff] %v2914_v54  ;;  %1131 = vperm.xlu2 %2343, %v2798_v5   ;;  %v659_v5 = vsub.f32 0.0, %v2914_v54 }
 0x148   : > { %1336 = vst.msk [vmem:[%s2878_s18 + $0x10] sm:$0xff] %vm1333_vm1, %v2914_v54  ;;  %v2924_v63 = vpop.permute.xlu2 %974 }
 0x149   : > { %4195 = vst [vmem:[#allocation6_spill] sm:$0xff] %v2924_v63  ;;  %v2351_v43 = vpop.eup %2350  ;;  %1430 = vrot.lane.b32.xlu0 %v2881_v29, %s2509_s19  ;;  %v693_v7 = vmul.f32 1.442695, %v659_v5 }
 0x14a   : > { %v754_v58 = vadd.f32 1.0, %v2351_v43  ;;  %v579_v44 = vpop.f32.mrf.mxu2  ;;  %v2353_v55 = vpop.eup %2352 }
 0x14b   : > { %v2929_v47 = vadd.f32 %v2871_v24, %v579_v44  ;;  %v753_v13 = vadd.f32 1.0, %v2353_v55 }
 0x14c   : > { %2354 = vrcp.f32 %v754_v58  ;;  %v534_v51 = vpop.f32.mrf.mxu0 }
 0x14d   : > { %v2933_v0 = vadd.f32 %v2871_v24, %v534_v51  ;;  %1135 = vperm.xlu1 %2342, %v2803_v6   ;;  %1352 = vst.msk [vmem:[%s2878_s18 + $0x90] sm:$0xff] %vm1333_vm1, %v2929_v47  ;;  %v2953_v6 = vld [vmem:[%s4145_s3 + $0x2] ss:$0 sm:$0xff]  ;;  %2356 = vpow2.f32 %v693_v7  ;;  %v675_v51 = vsub.f32 0.0, %v2929_v47 }
 0x14e   : > { %v979_v36 = vmul.f32 %v2953_v6, %v2650_v19  ;;  %2358 = vrcp.f32 %v753_v13 }
 0x14f   : > { %4196 = vst [vmem:[#allocation7_spill] sm:$0xff] %v2933_v0  ;;  %1432 = vrot.lane.b32.xlu2 %v2895_v1, %s2509_s19  ;;  %v660_v59 = vsub.f32 0.0, %v2933_v0 }
 0x150   : > { %1337 = vst.msk [vmem:[%s2878_s18 + $0x18] sm:$0xff] %vm1333_vm1, %v2933_v0 }
 0x151   : > { %v1016_v8 = vpop.permute.xlu2 %1015  ;;  %1436 = vrot.lane.b32.xlu0 %v2933_v0, %s2509_s19  ;;  %v695_v34 = vmul.f32 1.442695, %v660_v59 }
 0x152   : > { %v2355_v10 = vpop.eup %2354  ;;  %v582_v12 = vpop.f32.mrf.mxu2  ;;  %v1140_v15 = vmul.f32 %v2947_v4, %v1016_v8 }
 0x153   : > { %v2964_v18 = vadd.f32 %v2871_v24, %v582_v12  ;;  %v1205_v26 = vmul.f32 %v2355_v10, %v2960_v9  ;;  %2360 = vpow2.f32 %v695_v34  ;;  %v2357_v5 = vpop.eup %2356 }
 0x154   : > { %v537_v62 = vpop.f32.mrf.mxu0  ;;  %v1172_v30 = vadd.f32 %v1140_v15, %v979_v36  ;;  %v2359_v8 = vpop.eup %2358  ;;  %v725_v15 = vmul.f32 1.442695, %v675_v51  ;;  %v673_v51 = vsub.f32 0.0, %v2892_v38 }
 0x155   : > { %v2975_v50 = vadd.f32 %v2871_v24, %v537_v62  ;;  %1434 = vrot.lane.b32.xlu1 %v2914_v54, %s2509_s19  ;;  %1353 = vst.msk [vmem:[%s2878_s18 + $0x98] sm:$0xff] %vm1333_vm1, %v2964_v18  ;;  %v1238_v2 = vadd.f32 %v2969_v20, %v1205_v26 }
 0x156   : > { %v2983_v28 = vpop.permute.xlu1 %834  ;;  %v721_v0 = vmul.f32 1.442695, %v673_v51 }
 0x157   : > { %4197 = vst [vmem:[#allocation8_spill] sm:$0xff] %v2975_v50  ;;  %v661_v40 = vsub.f32 0.0, %v2975_v50  ;;  %1438 = vrot.lane.b32.xlu2 %v2975_v50, %s2509_s19  ;;  %v1270_v19 = vmul.f32 %v2355_v10, %v1238_v2  ;;  %v755_v10 = vadd.f32 1.0, %v2357_v5 }
 0x158   : > { %1338 = vst.msk [vmem:[%s2878_s18 + $0x20] sm:$0xff] %vm1333_vm1, %v2975_v50  ;;  %v3056_v50 = vmul.f32 %v2953_v6, %v2666_v23 }
 0x159   : > { %v2998_v43 = vpop.permute.xlu2 %1027  ;;  %v697_v58 = vmul.f32 1.442695, %v661_v40  ;;  %v3000_v44 = vadd.f32 %v1270_v19, %v1172_v30  ;;  %v2361_v13 = vpop.eup %2360  ;;  %v1204_v40 = vmul.f32 %v2359_v8, %v2960_v9 }
 0x15a   : > { %v585_v55 = vpop.f32.mrf.mxu2  ;;  %v756_v2 = vadd.f32 1.0, %v2361_v13  ;;  %v1143_v23 = vmul.f32 %v2947_v4, %v2998_v43  ;;  %v3077_v43 = vmul.f32 %v2953_v6, %v2696_v31 }
 0x15b   : > { %4198 = vst [vmem:[#allocation9_spill] sm:$0xff] %v3000_v44  ;;  %2362 = vpow2.f32 %v697_v58  ;;  %v3004_v7 = vadd.f32 %v2871_v24, %v585_v55  ;;  %v1237_v13 = vadd.f32 %v2969_v20, %v1204_v40  ;;  %v982_v40 = vmul.f32 %v2953_v6, %v2658_v21 }
 0x15c   : > { %1367 = vst.msk [vmem:[%s2996_s10 + $0x8] sm:$0xff] %vm1333_vm1, %v3000_v44  ;;  %v540_v59 = vpop.f32.mrf.mxu0  ;;  %2364 = vrcp.f32 %v755_v10 }
 0x15d   : > { %v3010_v12 = vadd.f32 %v2871_v24, %v540_v59  ;;  %1354 = vst.msk [vmem:[%s2878_s18 + $0xa0] sm:$0xff] %vm1333_vm1, %v3004_v7  ;;  %2366 = vpow2.f32 %v725_v15 }
 0x15e   : > { %v3015_v26 = vpop.permute.xlu1 %969 }
 0x15f   : > { %4199 = vst [vmem:[#allocation10_spill] sm:$0xff] %v3010_v12  ;;  %v662_v34 = vsub.f32 0.0, %v3010_v12  ;;  %1440 = vrot.lane.b32.xlu1 %v3010_v12, %s2509_s19 }
 0x160   : > { %4200 = vst [vmem:[#allocation11_spill] sm:$0xff] %v3015_v26 }
 0x161   : > { %1339 = vst.msk [vmem:[%s2878_s18 + $0x28] sm:$0xff] %vm1333_vm1, %v3010_v12  ;;  %v3023_v62 = vpop.permute.xlu2 %1035  ;;  %v2363_v36 = vpop.eup %2362  ;;  %v699_v30 = vmul.f32 1.442695, %v662_v34  ;;  %v674_v34 = vsub.f32 0.0, %v2911_v46 }
 0x162   : > { %v757_v19 = vadd.f32 1.0, %v2363_v36  ;;  %v588_v58 = vpop.f32.mrf.mxu2  ;;  %v3038_v15 = vpop.eup %2364 }
 0x163   : > { %2368 = vpow2.f32 %v699_v30  ;;  %v3027_v5 = vadd.f32 %v2871_v24, %v588_v58  ;;  %v978_v58 = vmul.f32 %v2953_v6, %v2642_v17  ;;  %v1206_v17 = vmul.f32 %v3038_v15, %v2960_v9 }
 0x164   : > { %2370 = vrcp.f32 %v757_v19  ;;  %v543_v55 = vpop.f32.mrf.mxu0  ;;  %v2367_v19 = vpop.eup %2366  ;;  %v723_v53 = vmul.f32 1.442695, %v674_v34  ;;  %v3073_v34 = vmul.f32 %v2953_v6, %v2682_v27 }
 0x165   : > { %2372 = vrcp.f32 %v756_v2  ;;  %v3031_v59 = vadd.f32 %v2871_v24, %v543_v55  ;;  %v678_v10 = vsub.f32 0.0, %v3027_v5  ;;  %1355 = vst.msk [vmem:[%s2878_s18 + $0xa8] sm:$0xff] %vm1333_vm1, %v3027_v5 }
 0x167   : > { %4201 = vst [vmem:[#allocation12_spill] sm:$0xff] %v3031_v59  ;;  %v663_v36 = vsub.f32 0.0, %v3031_v59  ;;  %v1012_v2 = vpop.permute.xlu1 %1011  ;;  %1442 = vrot.lane.b32.xlu0 %v3031_v59, %s2509_s19  ;;  %v731_v30 = vmul.f32 1.442695, %v678_v10 }
 0x168   : > { %1340 = vst.msk [vmem:[%s2878_s18 + $0x30] sm:$0xff] %vm1333_vm1, %v3031_v59  ;;  %v1139_v55 = vmul.f32 %v2947_v4, %v1012_v2  ;;  %v1269_v59 = vmul.f32 %v2359_v8, %v1237_v13  ;;  %v771_v8 = vadd.f32 1.0, %v2367_v19  ;;  %v676_v19 = vsub.f32 0.0, %v2964_v18 }
 0x169   : > { %v3052_v12 = vpop.permute.xlu2 %1047  ;;  %v2369_v54 = vpop.eup %2368  ;;  %v701_v1 = vmul.f32 1.442695, %v663_v36  ;;  %2374 = vpow2.f32 %v731_v30 }
 0x16a   : > { %v2371_v10 = vpop.eup %2370  ;;  %v758_v29 = vadd.f32 1.0, %v2369_v54  ;;  %v1171_v44 = vadd.f32 %v1139_v55, %v978_v58  ;;  %v830_v63 = vpop.permute.xlu0 %829  ;;  %v3067_v54 = vmul.f32 %v2953_v6, %v2674_v25 }
 0x16b   : > { %v591_v21 = vpop.f32.mrf.mxu2  ;;  %v3060_v2 = vpop.eup %2372  ;;  %2376 = vpow2.f32 %v701_v1  ;;  %v1208_v51 = vmul.f32 %v2371_v10, %v2960_v9  ;;  %v980_v30 = vmul.f32 %v2953_v6, %v830_v63 }
 0x16c   : > { %2378 = vrcp.f32 %v758_v29  ;;  %v546_v13 = vpop.f32.mrf.mxu0  ;;  %v3069_v36 = vadd.f32 %v1269_v59, %v1171_v44  ;;  %v1239_v29 = vadd.f32 %v2969_v20, %v1206_v17  ;;  %v1207_v27 = vmul.f32 %v3060_v2, %v2960_v9 }
 0x16d   : > { %v3080_v1 = vadd.f32 %v2871_v24, %v546_v13  ;;  %v1241_v25 = vadd.f32 %v2969_v20, %v1208_v51  ;;  %2380 = vpow2.f32 %v721_v0  ;;  %v1175_v44 = vadd.f32 %v1143_v23, %v982_v40 }
 0x16e   : > { %4202 = vst [vmem:[#allocation13_spill] sm:$0xff] %v3069_v36  ;;  %2382 = vpow2.f32 %v723_v53  ;;  %v3101_v53 = vadd.f32 %v2871_v24, %v591_v21  ;;  %v981_v17 = vmul.f32 %v2953_v6, %v2983_v28  ;;  %v677_v23 = vsub.f32 0.0, %v3004_v7 }
 0x16f   : > { %4203 = vst [vmem:[#allocation14_spill] sm:$0xff] %v3080_v1  ;;  %v664_v31 = vsub.f32 0.0, %v3080_v1  ;;  %v1020_v59 = vpop.permute.xlu1 %1019  ;;  %1444 = vrot.lane.b32.xlu2 %v3080_v1, %s2509_s19  ;;  %v1273_v63 = vmul.f32 %v2371_v10, %v1241_v25  ;;  %v2375_v0 = vpop.eup %2374  ;;  %2384 = vrcp.f32 %v771_v8 }
 0x170   : > { %1366 = vst.msk [vmem:[%s2996_s10] sm:$0xff] %vm1333_vm1, %v3069_v36  ;;  %v1141_v58 = vmul.f32 %v2947_v4, %v1020_v59  ;;  %v1271_v59 = vmul.f32 %v3038_v15, %v1239_v29  ;;  %v774_v36 = vadd.f32 1.0, %v2375_v0  ;;  %v3125_v0 = vmul.f32 %v2953_v6, %v2704_v33 }
 0x171   : > { %1341 = vst.msk [vmem:[%s2878_s18 + $0x38] sm:$0xff] %vm1333_vm1, %v3080_v1  ;;  %v3098_v55 = vpop.permute.xlu2 %1059  ;;  %v2377_v40 = vpop.eup %2376  ;;  %v703_v10 = vmul.f32 1.442695, %v664_v31  ;;  %v3106_v51 = vadd.f32 %v1273_v63, %v1175_v44  ;;  %v1240_v1 = vadd.f32 %v2969_v20, %v1207_v27 }
 0x172   : > { %v2379_v8 = vpop.eup %2378  ;;  %v759_v13 = vadd.f32 1.0, %v2377_v40  ;;  %v1173_v25 = vadd.f32 %v1141_v58, %v980_v30  ;;  %1356 = vst.msk [vmem:[%s2878_s18 + $0xb0] sm:$0xff] %vm1333_vm1, %v3101_v53  ;;  %v727_v30 = vmul.f32 1.442695, %v676_v19  ;;  %v3129_v58 = vmul.f32 %v2953_v6, %v2712_v35 }
 0x173   : > { %4204 = vst [vmem:[#allocation15_spill] sm:$0xff] %v3106_v51  ;;  %v594_v21 = vpop.f32.mrf.mxu2  ;;  %2386 = vpow2.f32 %v703_v10  ;;  %v1024_v28 = vpop.permute.xlu0 %1023  ;;  %v1209_v26 = vmul.f32 %v2379_v8, %v2960_v9  ;;  %v729_v40 = vmul.f32 1.442695, %v677_v23  ;;  %v1272_v23 = vmul.f32 %v3060_v2, %v1240_v1 }
 0x174   : > { %v3115_v44 = vadd.f32 %v2871_v24, %v594_v21  ;;  %1370 = vst.msk [vmem:[%s2996_s10 + $0x20] sm:$0xff] %vm1333_vm1, %v3106_v51  ;;  %v2381_v15 = vpop.eup %2380  ;;  %2388 = vrcp.f32 %v759_v13  ;;  %v3120_v29 = vadd.f32 %v1271_v59, %v1173_v25  ;;  %v1142_v27 = vmul.f32 %v2947_v4, %v1024_v28 }
 0x175   : > { %v549_v31 = vpop.f32.mrf.mxu1  ;;  %v2383_v63 = vpop.eup %2382  ;;  %v3141_v13 = vmul.f32 %v2953_v6, %v2720_v37  ;;  %v1242_v35 = vadd.f32 %v2969_v20, %v1209_v26  ;;  %v3150_v25 = vmul.f32 %v2953_v6, %v2728_v41  ;;  %v3154_v59 = vmul.f32 %v2953_v6, %v2768_v57 }
 0x176   : > { %4205 = vst [vmem:[#allocation16_spill] sm:$0xff] %v3120_v29  ;;  %v3132_v10 = vadd.f32 %v2871_v24, %v549_v31  ;;  %v3137_v19 = vpop.eup %2384  ;;  %v1174_v33 = vadd.f32 %v1142_v27, %v981_v17  ;;  %2390 = vrcp.f32 %v774_v36  ;;  %v679_v2 = vsub.f32 0.0, %v3101_v53 }
 0x177   : > { %1357 = vst.msk [vmem:[%s2878_s18 + $0xb8] sm:$0xff] %vm1333_vm1, %v3115_v44  ;;  %v1032_v21 = vpop.permute.xlu1 %1031  ;;  %2392 = vpow2.f32 %v727_v30  ;;  %v769_v1 = vadd.f32 1.0, %v2381_v15  ;;  %v1222_v28 = vmul.f32 %v3137_v19, %v2960_v9  ;;  %v1145_v15 = vmul.f32 %v2947_v4, %v3023_v62 }
 0x178   : > { %4206 = vst [vmem:[#allocation17_spill] sm:$0xff] %v3132_v10  ;;  %v665_v37 = vsub.f32 0.0, %v3132_v10  ;;  %1446 = vrot.lane.b32.xlu1 %v3132_v10, %s2509_s19  ;;  %v1144_v26 = vmul.f32 %v2947_v4, %v1032_v21  ;;  %v3166_v57 = vadd.f32 %v1272_v23, %v1174_v33  ;;  %2394 = vpow2.f32 %v729_v40 }
 0x179   : > { %1368 = vst.msk [vmem:[%s2996_s10 + $0x10] sm:$0xff] %vm1333_vm1, %v3120_v29  ;;  %v3163_v41 = vpop.permute.xlu2 %1071  ;;  %v2387_v36 = vpop.eup %2386  ;;  %v680_v21 = vsub.f32 0.0, %v3115_v44  ;;  %v770_v33 = vadd.f32 1.0, %v2383_v63  ;;  %v1255_v63 = vadd.f32 %v2969_v20, %v1222_v28 }
 0x17a   : > { %1342 = vst.msk [vmem:[%s2878_s18 + $0x40] sm:$0xff] %vm1333_vm1, %v3132_v10  ;;  %v705_v17 = vmul.f32 1.442695, %v665_v37  ;;  %v2389_v27 = vpop.eup %2388  ;;  %v760_v31 = vadd.f32 1.0, %v2387_v36  ;;  %v1176_v30 = vadd.f32 %v1144_v26, %v3056_v50  ;;  %v1274_v10 = vmul.f32 %v2379_v8, %v1242_v35  ;;  %v597_v51 = vpop.f32.mrf.mxu3 }
 0x17b   : > { %4207 = vst [vmem:[#allocation18_spill] sm:$0xff] %v3163_v41  ;;  %v3178_v40 = vadd.f32 %v2871_v24, %v597_v51  ;;  %v3180_v23 = vpop.permute.xlu0 %1043  ;;  %v733_v35 = vmul.f32 1.442695, %v679_v2  ;;  %v1210_v37 = vmul.f32 %v2389_v27, %v2960_v9  ;;  %v3197_v2 = vmul.f32 %v2953_v6, %v2778_v61 }
 0x17c   : > { %4208 = vst [vmem:[#allocation19_spill] sm:$0xff] %v3166_v57  ;;  %2396 = vpow2.f32 %v705_v17  ;;  %v3182_v50 = vadd.f32 %v1274_v10, %v1176_v30  ;;  %v3185_v26 = vpop.eup %2390  ;;  %v996_v36 = vmul.f32 %v2953_v6, %v2791_v3  ;;  %v3207_v30 = vmul.f32 %v2953_v6, %v2807_v39 }
 0x17d   : > { %1369 = vst.msk [vmem:[%s2996_s10 + $0x18] sm:$0xff] %vm1333_vm1, %v3166_v57  ;;  %2398 = vrcp.f32 %v760_v31  ;;  %v552_v8 = vpop.f32.mrf.mxu1  ;;  %v681_v62 = vsub.f32 0.0, %v3178_v40  ;;  %v2393_v10 = vpop.eup %2392  ;;  %v1243_v17 = vadd.f32 %v2969_v20, %v1210_v37  ;;  %v1177_v3 = vadd.f32 %v1145_v15, %v3067_v54 }
 0x17e   : > { %4209 = vst [vmem:[#allocation20_spill] sm:$0xff] %v3178_v40  ;;  %2400 = vrcp.f32 %v769_v1  ;;  %v3192_v51 = vadd.f32 %v2871_v24, %v552_v8  ;;  %v735_v1 = vmul.f32 1.442695, %v680_v21  ;;  %v2395_v31 = vpop.eup %2394  ;;  %v1225_v39 = vmul.f32 %v3185_v26, %v2960_v9 }
 0x17f   : > { %4210 = vst [vmem:[#allocation21_spill] sm:$0xff] %v3182_v50  ;;  %2402 = vrcp.f32 %v770_v33  ;;  %v737_v28 = vmul.f32 1.442695, %v681_v62  ;;  %v1040_v61 = vpop.permute.xlu1 %1039  ;;  %v1275_v37 = vmul.f32 %v2389_v27, %v1243_v17 }
 0x180   : > { %1358 = vst.msk [vmem:[%s2878_s18 + $0xc0] sm:$0xff] %vm1333_vm1, %v3178_v40  ;;  %v666_v8 = vsub.f32 0.0, %v3192_v51  ;;  %1448 = vrot.lane.b32.xlu0 %v3192_v51, %s2509_s19  ;;  %2404 = vpow2.f32 %v733_v35  ;;  %v772_v40 = vadd.f32 1.0, %v2393_v10 }
 0x181   : > { %4211 = vst [vmem:[#allocation22_spill] sm:$0xff] %v3192_v51  ;;  %v1084_v21 = vpop.permute.xlu2 %1083  ;;  %2406 = vpow2.f32 %v737_v28  ;;  %v3220_v54 = vadd.f32 %v1275_v37, %v1177_v3  ;;  %v999_v3 = vmul.f32 %v2953_v6, %v2821_v52 }
 0x182   : > { %1371 = vst.msk [vmem:[%s2996_s10 + $0x28] sm:$0xff] %vm1333_vm1, %v3182_v50  ;;  %v2397_v57 = vpop.eup %2396  ;;  %v707_v33 = vmul.f32 1.442695, %v666_v8  ;;  %v1157_v62 = vmul.f32 %v2947_v4, %v1084_v21  ;;  %v1287_v50 = vmul.f32 %v3137_v19, %v1255_v63  ;;  %2408 = vpow2.f32 %v735_v1 }
 0x183   : > { %1343 = vst.msk [vmem:[%s2878_s18 + $0x48] sm:$0xff] %vm1333_vm1, %v3192_v51  ;;  %v2399_v29 = vpop.eup %2398  ;;  %v761_v41 = vadd.f32 1.0, %v2397_v57  ;;  %v600_v51 = vpop.f32.mrf.mxu3  ;;  %v773_v63 = vadd.f32 1.0, %v2395_v31  ;;  %v1146_v57 = vmul.f32 %v2947_v4, %v1040_v61  ;;  %v1258_v1 = vadd.f32 %v2969_v20, %v1225_v39 }
 0x184   : > { %4212 = vst [vmem:[#allocation23_spill] sm:$0xff] %v3220_v54  ;;  %v3222_v27 = vpop.eup %2400  ;;  %2410 = vpow2.f32 %v707_v33  ;;  %v1189_v15 = vadd.f32 %v1157_v62, %v996_v36  ;;  %v3225_v35 = vadd.f32 %v2871_v24, %v600_v51  ;;  %v3227_v17 = vpop.permute.xlu0 %1055  ;;  %v1211_v19 = vmul.f32 %v2399_v29, %v2960_v9 }
 0x185   : > { %2412 = vrcp.f32 %v761_v41  ;;  %v555_v10 = vpop.f32.mrf.mxu1  ;;  %1372 = vst.msk [vmem:[%s2996_s10 + $0x30] sm:$0xff] %vm1333_vm1, %v3220_v54  ;;  %v3235_v28 = vpop.eup %2402  ;;  %v3249_v61 = vmul.f32 %v2953_v6, %v2816_v48  ;;  %v3255_v21 = vmul.f32 %v2953_v6, %v2827_v56  ;;  %v1220_v37 = vmul.f32 %v3222_v27, %v2960_v9 }
 0x186   : > { %v682_v51 = vsub.f32 0.0, %v3225_v35  ;;  %1359 = vst.msk [vmem:[%s2878_s18 + $0xc8] sm:$0xff] %vm1333_vm1, %v3225_v35  ;;  %v3242_v36 = vadd.f32 %v2871_v24, %v555_v10  ;;  %v1244_v41 = vadd.f32 %v2969_v20, %v1211_v19  ;;  %v3245_v31 = vadd.f32 %v1287_v50, %v1189_v15  ;;  %v2405_v8 = vpop.eup %2404 }
 0x187   : > { %v2407_v39 = vpop.eup %2406  ;;  %2414 = vrcp.f32 %v772_v40  ;;  %v3263_v48 = vpop.permute.xlu1 %1051  ;;  %v1178_v15 = vadd.f32 %v1146_v57, %v3073_v34  ;;  %v1221_v40 = vmul.f32 %v3235_v28, %v2960_v9  ;;  %v1147_v34 = vmul.f32 %v2947_v4, %v3180_v23 }
 0x188   : > { %4213 = vst [vmem:[#allocation24_spill] sm:$0xff] %v3242_v36  ;;  %v739_v50 = vmul.f32 1.442695, %v682_v51  ;;  %v667_v33 = vsub.f32 0.0, %v3242_v36  ;;  %1450 = vrot.lane.b32.xlu2 %v3242_v36, %s2509_s19  ;;  %v1276_v52 = vmul.f32 %v2399_v29, %v1244_v41  ;;  %v2409_v56 = vpop.eup %2408  ;;  %2416 = vrcp.f32 %v773_v63 }
 0x189   : > { %4214 = vst [vmem:[#allocation25_spill] sm:$0xff] %v3245_v31  ;;  %v777_v62 = vadd.f32 1.0, %v2407_v39  ;;  %v1096_v19 = vpop.permute.xlu2 %1095  ;;  %v1253_v23 = vadd.f32 %v2969_v20, %v1220_v37  ;;  %v3306_v37 = vmul.f32 %v2953_v6, %v2834_v60 }
 0x18a   : > { %1344 = vst.msk [vmem:[%s2878_s18 + $0x50] sm:$0xff] %vm1333_vm1, %v3242_v36  ;;  %v2411_v10 = vpop.eup %2410  ;;  %2418 = vpow2.f32 %v739_v50  ;;  %v709_v51 = vmul.f32 1.442695, %v667_v33  ;;  %v1160_v54 = vmul.f32 %v2947_v4, %v1096_v19  ;;  %v1290_v36 = vmul.f32 %v3185_v26, %v1258_v1 }
 0x18b   : > { %1384 = vst.msk [vmem:[%s2996_s10 + $0x90] sm:$0xff] %vm1333_vm1, %v3245_v31  ;;  %v2413_v29 = vpop.eup %2412  ;;  %2420 = vrcp.f32 %v777_v62  ;;  %v762_v63 = vadd.f32 1.0, %v2411_v10  ;;  %v603_v57 = vpop.f32.mrf.mxu3  ;;  %v3277_v41 = vadd.f32 %v1276_v52, %v1178_v15  ;;  %v776_v26 = vadd.f32 1.0, %v2409_v56 }
 0x18c   : > { %v1212_v39 = vmul.f32 %v2413_v29, %v2960_v9  ;;  %2422 = vpow2.f32 %v709_v51  ;;  %v1192_v50 = vadd.f32 %v1160_v54, %v999_v3  ;;  %v3281_v33 = vadd.f32 %v2871_v24, %v603_v57  ;;  %v3283_v19 = vpop.permute.xlu0 %1067 }
 0x18d   : > { %4215 = vst [vmem:[#allocation26_spill] sm:$0xff] %v3277_v41  ;;  %2424 = vrcp.f32 %v762_v63  ;;  %v558_v1 = vpop.f32.mrf.mxu1  ;;  %v1254_v62 = vadd.f32 %v2969_v20, %v1221_v40  ;;  %v3290_v52 = vpop.eup %2414  ;;  %v1002_v10 = vmul.f32 %v2953_v6, %v2841_v11  ;;  %v3312_v51 = vmul.f32 %v2953_v6, %v2855_v16 }
 0x18e   : > { %1373 = vst.msk [vmem:[%s2996_s10 + $0x38] sm:$0xff] %vm1333_vm1, %v3277_v41  ;;  %v1245_v54 = vadd.f32 %v2969_v20, %v1212_v39  ;;  %v683_v3 = vsub.f32 0.0, %v3281_v33  ;;  %v3298_v56 = vadd.f32 %v2871_v24, %v558_v1  ;;  %v3300_v15 = vadd.f32 %v1290_v36, %v1192_v50  ;;  %v3302_v40 = vpop.eup %2416 }
 0x18f   : > { %1360 = vst.msk [vmem:[%s2878_s18 + $0xd0] sm:$0xff] %vm1333_vm1, %v3281_v33  ;;  %v775_v63 = vadd.f32 1.0, %v2405_v8  ;;  %v1179_v36 = vadd.f32 %v1147_v34, %v3077_v43  ;;  %v3319_v60 = vpop.permute.xlu1 %1063  ;;  %v1148_v16 = vmul.f32 %v2947_v4, %v3052_v12  ;;  %2426 = vrcp.f32 %v776_v26 }
 0x190   : > { %4216 = vst [vmem:[#allocation27_spill] sm:$0xff] %v3298_v56  ;;  %v2419_v57 = vpop.eup %2418  ;;  %v1277_v39 = vmul.f32 %v2413_v29, %v1245_v54  ;;  %v741_v50 = vmul.f32 1.442695, %v683_v3  ;;  %v668_v1 = vsub.f32 0.0, %v3298_v56  ;;  %1452 = vrot.lane.b32.xlu1 %v3298_v56, %s2509_s19  ;;  %v1286_v43 = vmul.f32 %v3235_v28, %v1254_v62 }
 0x191   : > { %4217 = vst [vmem:[#allocation28_spill] sm:$0xff] %v3300_v15  ;;  %v2421_v11 = vpop.eup %2420  ;;  %v1108_v8 = vpop.permute.xlu2 %1107  ;;  %v3327_v29 = vmul.f32 %v3222_v27, %v1253_v23  ;;  %v778_v23 = vadd.f32 1.0, %v2419_v57 }
 0x192   : > { %1345 = vst.msk [vmem:[%s2878_s18 + $0x58] sm:$0xff] %vm1333_vm1, %v3298_v56  ;;  %v2423_v34 = vpop.eup %2422  ;;  %v3332_v54 = vadd.f32 %v1277_v39, %v1179_v36  ;;  %2428 = vpow2.f32 %v741_v50  ;;  %v711_v3 = vmul.f32 1.442695, %v668_v1  ;;  %v1223_v56 = vmul.f32 %v3290_v52, %v2960_v9 }
 0x193   : > { %1387 = vst.msk [vmem:[%s2996_s10 + $0xa8] sm:$0xff] %vm1333_vm1, %v3300_v15  ;;  %v2425_v12 = vpop.eup %2424  ;;  %2430 = vrcp.f32 %v775_v63  ;;  %v763_v26 = vadd.f32 1.0, %v2423_v34  ;;  %v1163_v28 = vmul.f32 %v2947_v4, %v1108_v8  ;;  %v606_v62 = vpop.f32.mrf.mxu3  ;;  %v1228_v27 = vmul.f32 %v2421_v11, %v2960_v9 }
 0x194   : > { %4218 = vst [vmem:[#allocation29_spill] sm:$0xff] %v3332_v54  ;;  %2432 = vpow2.f32 %v711_v3  ;;  %v3342_v39 = vadd.f32 %v2871_v24, %v606_v62  ;;  %v1080_v36 = vpop.permute.xlu0 %1079  ;;  %v1213_v50 = vmul.f32 %v2425_v12, %v2960_v9  ;;  %v1180_v63 = vadd.f32 %v1148_v16, %v3125_v0 }
 0x195   : > { %1374 = vst.msk [vmem:[%s2996_s10 + $0x40] sm:$0xff] %vm1333_vm1, %v3332_v54  ;;  %2434 = vrcp.f32 %v763_v26  ;;  %v1156_v1 = vmul.f32 %v2947_v4, %v1080_v36  ;;  %v561_v8 = vpop.f32.mrf.mxu1  ;;  %v1261_v34 = vadd.f32 %v2969_v20, %v1228_v27  ;;  %v1256_v62 = vadd.f32 %v2969_v20, %v1223_v56  ;;  %v3357_v0 = vpop.eup %2426 }
 0x196   : > { %v684_v15 = vsub.f32 0.0, %v3342_v39  ;;  %1361 = vst.msk [vmem:[%s2878_s18 + $0xd8] sm:$0xff] %vm1333_vm1, %v3342_v39  ;;  %v3353_v57 = vadd.f32 %v2871_v24, %v561_v8  ;;  %v1246_v3 = vadd.f32 %v2969_v20, %v1213_v50  ;;  %v1195_v16 = vadd.f32 %v1163_v28, %v1002_v10 }
 0x197   : > { %v1188_v26 = vadd.f32 %v1156_v1, %v3197_v2  ;;  %v1224_v27 = vmul.f32 %v3302_v40, %v2960_v9  ;;  %v1293_v36 = vmul.f32 %v2421_v11, %v1261_v34  ;;  %2436 = vrcp.f32 %v778_v23  ;;  %v1076_v50 = vpop.permute.xlu1 %1075 }
 0x198   : > { %4219 = vst [vmem:[#allocation30_spill] sm:$0xff] %v3353_v57  ;;  %v2429_v31 = vpop.eup %2428  ;;  %v743_v41 = vmul.f32 1.442695, %v684_v15  ;;  %v669_v54 = vsub.f32 0.0, %v3353_v57  ;;  %1454 = vrot.lane.b32.xlu0 %v3353_v57, %s2509_s19  ;;  %v1278_v56 = vmul.f32 %v2425_v12, %v1246_v3  ;;  %v1155_v11 = vmul.f32 %v2947_v4, %v1076_v50 }
 0x199   : > { %1346 = vst.msk [vmem:[%s2878_s18 + $0x60] sm:$0xff] %vm1333_vm1, %v3353_v57  ;;  %v3368_v10 = vpop.eup %2430  ;;  %v779_v2 = vadd.f32 1.0, %v2429_v31  ;;  %v3370_v28 = vadd.f32 %v1286_v43, %v1188_v26  ;;  %v3373_v23 = vpop.permute.xlu2 %1119  ;;  %v3375_v15 = vadd.f32 %v1293_v36, %v1195_v16  ;;  %v1227_v34 = vmul.f32 %v3357_v0, %v2960_v9 }
 0x19a   : > { %v2433_v1 = vpop.eup %2432  ;;  %2438 = vpow2.f32 %v743_v41  ;;  %v713_v8 = vmul.f32 1.442695, %v669_v54  ;;  %v3379_v57 = vadd.f32 %v1278_v56, %v1180_v63  ;;  %v1187_v43 = vadd.f32 %v1155_v11, %v3154_v59 }
 0x19b   : > { %4220 = vst [vmem:[#allocation31_spill] sm:$0xff] %v3375_v15  ;;  %v2435_v12 = vpop.eup %2434  ;;  %2440 = vrcp.f32 %v779_v2  ;;  %v764_v31 = vadd.f32 1.0, %v2433_v1  ;;  %v609_v3 = vpop.f32.mrf.mxu3  ;;  %v1257_v16 = vadd.f32 %v2969_v20, %v1224_v27  ;;  %v1226_v26 = vmul.f32 %v3368_v10, %v2960_v9 }
 0x19c   : > { %1383 = vst.msk [vmem:[%s2996_s10 + $0x88] sm:$0xff] %vm1333_vm1, %v3370_v28  ;;  %2442 = vpow2.f32 %v713_v8  ;;  %v3387_v41 = vadd.f32 %v2871_v24, %v609_v3  ;;  %v1092_v54 = vpop.permute.xlu0 %1091  ;;  %v1214_v63 = vmul.f32 %v2435_v12, %v2960_v9  ;;  %v1149_v59 = vmul.f32 %v2947_v4, %v3263_v48 }
 0x19d   : > { %1375 = vst.msk [vmem:[%s2996_s10 + $0x48] sm:$0xff] %vm1333_vm1, %v3379_v57  ;;  %2444 = vrcp.f32 %v764_v31  ;;  %v1159_v27 = vmul.f32 %v2947_v4, %v1092_v54  ;;  %v564_v36 = vpop.f32.mrf.mxu1  ;;  %v3399_v50 = vadd.f32 %v3327_v29, %v1187_v43  ;;  %v3404_v56 = vpop.eup %2436  ;;  %v1260_v11 = vadd.f32 %v2969_v20, %v1227_v34 }
 0x19e   : > { %1390 = vst.msk [vmem:[%s2996_s10 + $0xc0] sm:$0xff] %vm1333_vm1, %v3375_v15  ;;  %v685_v2 = vsub.f32 0.0, %v3387_v41  ;;  %v3411_v48 = vadd.f32 %v2871_v24, %v564_v36  ;;  %v1247_v1 = vadd.f32 %v2969_v20, %v1214_v63  ;;  %v1005_v29 = vmul.f32 %v2953_v6, %v2862_v22 }
 0x19f   : > { %4221 = vst [vmem:[#allocation32_spill] sm:$0xff] %v3399_v50  ;;  %v1289_v8 = vmul.f32 %v3302_v40, %v1257_v16  ;;  %v1191_v31 = vadd.f32 %v1159_v27, %v3249_v61  ;;  %v1288_v43 = vmul.f32 %v3290_v52, %v1256_v62  ;;  %v1150_v54 = vmul.f32 %v2947_v4, %v3227_v17  ;;  %v1088_v22 = vpop.permute.xlu1 %1087 }
 0x1a0   : > { %1362 = vst.msk [vmem:[%s2878_s18 + $0xe0] sm:$0xff] %vm1333_vm1, %v3387_v41  ;;  %v2439_v3 = vpop.eup %2438  ;;  %v745_v36 = vmul.f32 1.442695, %v685_v2  ;;  %v670_v34 = vsub.f32 0.0, %v3411_v48  ;;  %1456 = vrot.lane.b32.xlu2 %v3411_v48, %s2509_s19  ;;  %v1279_v61 = vmul.f32 %v2435_v12, %v1247_v1  ;;  %v1181_v52 = vadd.f32 %v1149_v59, %v3129_v58 }
 0x1a1   : > { %4222 = vst [vmem:[#allocation33_spill] sm:$0xff] %v3411_v48  ;;  %v3431_v40 = vpop.eup %2440  ;;  %v780_v62 = vadd.f32 1.0, %v2439_v3  ;;  %v3434_v16 = vadd.f32 %v1289_v8, %v1191_v31  ;;  %v1158_v17 = vmul.f32 %v2947_v4, %v1088_v22  ;;  %v3437_v63 = vpop.permute.xlu2 %1131  ;;  %v1292_v15 = vmul.f32 %v3357_v0, %v1260_v11 }
 0x1a2   : > { %1382 = vst.msk [vmem:[%s2996_s10 + $0x80] sm:$0xff] %vm1333_vm1, %v3399_v50  ;;  %v2443_v27 = vpop.eup %2442  ;;  %2446 = vpow2.f32 %v745_v36  ;;  %v715_v2 = vmul.f32 1.442695, %v670_v34  ;;  %v3445_v1 = vadd.f32 %v1279_v61, %v1181_v52  ;;  %v1166_v8 = vmul.f32 %v2947_v4, %v3373_v23 }
 0x1a3   : > { %1347 = vst.msk [vmem:[%s2878_s18 + $0x68] sm:$0xff] %vm1333_vm1, %v3411_v48  ;;  %v1259_v48 = vadd.f32 %v2969_v20, %v1226_v26  ;;  %v2445_v50 = vpop.eup %2444  ;;  %2448 = vrcp.f32 %v780_v62  ;;  %v765_v12 = vadd.f32 1.0, %v2443_v27  ;;  %v1190_v58 = vadd.f32 %v1158_v17, %v3207_v30  ;;  %v612_v59 = vpop.f32.mrf.mxu3 }
 0x1a4   : > { %1386 = vst.msk [vmem:[%s2996_s10 + $0xa0] sm:$0xff] %vm1333_vm1, %v3434_v16  ;;  %2450 = vpow2.f32 %v715_v2  ;;  %v3450_v0 = vadd.f32 %v2871_v24, %v612_v59  ;;  %v1104_v26 = vpop.permute.xlu0 %1103  ;;  %v1230_v11 = vmul.f32 %v3431_v40, %v2960_v9  ;;  %v1215_v3 = vmul.f32 %v2445_v50, %v2960_v9 }
 0x1a5   : > { %2452 = vrcp.f32 %v765_v12  ;;  %v1162_v31 = vmul.f32 %v2947_v4, %v1104_v26  ;;  %v567_v30 = vpop.f32.mrf.mxu1  ;;  %1376 = vst.msk [vmem:[%s2996_s10 + $0x50] sm:$0xff] %vm1333_vm1, %v3445_v1  ;;  %v3459_v23 = vadd.f32 %v1288_v43, %v1190_v58  ;;  %v1151_v36 = vmul.f32 %v2947_v4, %v3098_v55 }
 0x1a6   : > { %v686_v34 = vsub.f32 0.0, %v3450_v0  ;;  %1363 = vst.msk [vmem:[%s2878_s18 + $0xe8] sm:$0xff] %vm1333_vm1, %v3450_v0  ;;  %v3468_v22 = vadd.f32 %v2871_v24, %v567_v30  ;;  %v1229_v61 = vmul.f32 %v3404_v56, %v2960_v9  ;;  %v1182_v52 = vadd.f32 %v1150_v54, %v3141_v13 }
 0x1a7   : > { %v1194_v62 = vadd.f32 %v1162_v31, %v3306_v37  ;;  %v1248_v43 = vadd.f32 %v2969_v20, %v1215_v3  ;;  %1385 = vst.msk [vmem:[%s2996_s10 + $0x98] sm:$0xff] %vm1333_vm1, %v3459_v23  ;;  %v1291_v55 = vmul.f32 %v3368_v10, %v1259_v48  ;;  %v1198_v27 = vadd.f32 %v1166_v8, %v1005_v29  ;;  %v1100_v12 = vpop.permute.xlu1 %1099 }
 0x1a8   : > { %v2447_v17 = vpop.eup %2446  ;;  %v747_v2 = vmul.f32 1.442695, %v686_v34  ;;  %v671_v24 = vsub.f32 0.0, %v3468_v22  ;;  %1348 = vst.msk [vmem:[%s2878_s18 + $0x70] sm:$0xff] %vm1333_vm1, %v3468_v22  ;;  %1462 = vrot.lane.b32.xlu2 %v2892_v38, %s2509_s19  ;;  %1458 = vrot.lane.b32.xlu1 %v3468_v22, %s2509_s19  ;;  %v1263_v13 = vadd.f32 %v2969_v20, %v1230_v11  ;;  %v1161_v29 = vmul.f32 %v2947_v4, %v1100_v12 }
 0x1a9   : > { %v2449_v37 = vpop.eup %2448  ;;  %v781_v10 = vadd.f32 1.0, %v2447_v17  ;;  %v3488_v48 = vadd.f32 %v1292_v15, %v1194_v62  ;;  %v1433_v54 = vpop.permute.xlu2 %1432  ;;  %v1280_v58 = vmul.f32 %v2445_v50, %v1248_v43  ;;  %v1262_v31 = vadd.f32 %v2969_v20, %v1229_v61  ;;  %v2478_v61 = vld [vmem:[%s4144_s2] ss:$0 sm:$0xff] }
 0x1aa   : > { %v2451_v59 = vpop.eup %2450  ;;  %v1231_v8 = vmul.f32 %v2449_v37, %v2960_v9  ;;  %2454 = vpow2.f32 %v747_v2  ;;  %v717_v26 = vmul.f32 1.442695, %v671_v24  ;;  %2173 = vst.msk [vmem:[%s2878_s18 + $0x108] sm:$0xff] %vm1333_vm1, %v1433_v54  ;;  %v1193_v15 = vadd.f32 %v1161_v29, %v3255_v21 }
 0x1ab   : > { %v2453_v30 = vpop.eup %2452  ;;  %2456 = vrcp.f32 %v781_v10  ;;  %v766_v11 = vadd.f32 1.0, %v2451_v59  ;;  %1389 = vst.msk [vmem:[%s2996_s10 + $0xb8] sm:$0xff] %vm1333_vm1, %v3488_v48  ;;  %v615_v3 = vpop.f32.mrf.mxu3  ;;  %v3499_v50 = vadd.f32 %v1280_v58, %v1182_v52  ;;  %v1295_v21 = vmul.f32 %v3431_v40, %v1263_v13 }
 0x1ac   : > { %v1264_v34 = vadd.f32 %v2969_v20, %v1231_v8  ;;  %2458 = vpow2.f32 %v717_v26  ;;  %v3505_v62 = vadd.f32 %v2478_v61, %v615_v3  ;;  %v1116_v43 = vpop.permute.xlu0 %1115  ;;  %v1216_v17 = vmul.f32 %v2453_v30, %v2960_v9 }
 0x1ad   : > { %2460 = vrcp.f32 %v766_v11  ;;  %v1165_v2 = vmul.f32 %v2947_v4, %v1116_v43  ;;  %v570_v52 = vpop.f32.mrf.mxu1  ;;  %1377 = vst.msk [vmem:[%s2996_s10 + $0x58] sm:$0xff] %vm1333_vm1, %v3499_v50  ;;  %v3513_v24 = vadd.f32 %v1291_v55, %v1193_v15  ;;  %v1003_v40 = vmul.f32 %v2953_v6, %v2848_v14  ;;  %v3557_v43 = vld [vmem:[%s4145_s3 + $0x3] ss:$0 sm:$0xff] }
 0x1ae   : > { %v1296_v12 = vmul.f32 %v2449_v37, %v1264_v34  ;;  %v687_v10 = vsub.f32 0.0, %v3505_v62  ;;  %1364 = vst.msk [vmem:[%s2878_s18 + $0xf0] sm:$0xff] %vm1333_vm1, %v3505_v62  ;;  %v3519_v29 = vadd.f32 %v2478_v61, %v570_v52  ;;  %v1249_v54 = vadd.f32 %v2969_v20, %v1216_v17 }
 0x1af   : > { %v1183_v13 = vadd.f32 %v1151_v36, %v3150_v25  ;;  %v1197_v58 = vadd.f32 %v1165_v2, %v3312_v51  ;;  %1388 = vst.msk [vmem:[%s2996_s10 + $0xb0] sm:$0xff] %vm1333_vm1, %v3513_v24  ;;  %v1112_v20 = vpop.permute.xlu1 %1111  ;;  %v1152_v17 = vmul.f32 %v3557_v43, %v3319_v60  ;;  %v3568_v2 = vld [vmem:[%s4145_s3 + $0x1] ss:$0 sm:$0xff]  ;;  %v3579_v60 = vld [vmem:[%s4145_s3] ss:$0 sm:$0xff] }
 0x1b0   : > { %v2455_v55 = vpop.eup %2454  ;;  %v3529_v37 = vadd.f32 %v1296_v12, %v1198_v27  ;;  %v749_v59 = vmul.f32 1.442695, %v687_v10  ;;  %v672_v8 = vsub.f32 0.0, %v3519_v29  ;;  %1349 = vst.msk [vmem:[%s2878_s18 + $0x78] sm:$0xff] %vm1333_vm1, %v3519_v29  ;;  %1468 = vrot.lane.b32.xlu2 %v2964_v18, %s2509_s19  ;;  %1464 = vrot.lane.b32.xlu1 %v2911_v46, %s2509_s19  ;;  %v1281_v14 = vmul.f32 %v2453_v30, %v1249_v54  ;;  %v3585_v10 = vld [vmem:[%s4145_s3 + $0x2] ss:$0 sm:$0xff] }
 0x1b1   : > { %v2457_v6 = vpop.eup %2456  ;;  %v782_v25 = vadd.f32 1.0, %v2455_v55  ;;  %v3539_v51 = vadd.f32 %v1295_v21, %v1197_v58  ;;  %v1164_v36 = vmul.f32 %v2947_v4, %v1112_v20  ;;  %1460 = vrot.lane.b32.xlu0 %v3519_v29, %s2509_s19  ;;  %v1294_v27 = vmul.f32 %v3404_v56, %v1262_v31  ;;  %v1439_v30 = vpop.permute.xlu2 %1438 }
 0x1b2   : > { %v2459_v26 = vpop.eup %2458  ;;  %1393 = vst.msk [vmem:[%s2996_s10 + $0xd8] sm:$0xff] %vm1333_vm1, %v3529_v37  ;;  %2462 = vpow2.f32 %v749_v59  ;;  %v719_v11 = vmul.f32 1.442695, %v672_v8  ;;  %v3548_v15 = vadd.f32 %v1281_v14, %v1183_v13  ;;  %v1232_v3 = vmul.f32 %v2457_v6, %v2960_v9 }
 0x1b3   : > { %v2461_v34 = vpop.eup %2460  ;;  %2464 = vrcp.f32 %v782_v25  ;;  %v767_v4 = vadd.f32 1.0, %v2459_v26  ;;  %1392 = vst.msk [vmem:[%s2996_s10 + $0xd0] sm:$0xff] %vm1333_vm1, %v3539_v51  ;;  %v1196_v56 = vadd.f32 %v1164_v36, %v1003_v40  ;;  %v618_v31 = vpop.f32.mrf.mxu3  ;;  %v991_v54 = vmul.f32 %v3585_v10, %v2738_v45 }
 0x1b4   : > { %2466 = vpow2.f32 %v719_v11  ;;  %2176 = vst.msk [vmem:[%s2878_s18 + $0x120] sm:$0xff] %vm1333_vm1, %v1439_v30  ;;  %v3563_v9 = vadd.f32 %v2478_v61, %v618_v31  ;;  %v1128_v21 = vpop.permute.xlu0 %1127  ;;  %v1217_v52 = vmul.f32 %v3568_v2, %v2461_v34  ;;  %v1265_v61 = vadd.f32 %v3579_v60, %v1232_v3 }
 0x1b5   : > { %2468 = vrcp.f32 %v767_v4  ;;  %1378 = vst.msk [vmem:[%s2996_s10 + $0x60] sm:$0xff] %vm1333_vm1, %v3548_v15  ;;  %v3574_v12 = vadd.f32 %v1294_v27, %v1196_v56  ;;  %v1184_v55 = vadd.f32 %v1152_v17, %v991_v54  ;;  %v1006_v14 = vmul.f32 %v3585_v10, %v2888_v32 }
 0x1b6   : > { %v688_v40 = vsub.f32 0.0, %v3563_v9  ;;  %1365 = vst.msk [vmem:[%s2878_s18 + $0xf8] sm:$0xff] %vm1333_vm1, %v3563_v9  ;;  %v1250_v13 = vadd.f32 %v3579_v60, %v1217_v52  ;;  %v1297_v27 = vmul.f32 %v2457_v6, %v1265_v61  ;;  %v1168_v30 = vmul.f32 %v3557_v43, %v1128_v21 }
 0x1b7   : > { %1391 = vst.msk [vmem:[%s2996_s10 + $0xc8] sm:$0xff] %vm1333_vm1, %v3574_v12  ;;  %v1124_v8 = vpop.permute.xlu1 %1123  ;;  %v1007_v56 = vmul.f32 %v3585_v10, %v2906_v42  ;;  %v1153_v6 = vmul.f32 %v3557_v43, %v3283_v19  ;;  %v992_v61 = vmul.f32 %v3585_v10, %v2748_v49 }
 0x1b8   : > { %v2463_v58 = vpop.eup %2462  ;;  %v751_v59 = vmul.f32 1.442695, %v688_v40  ;;  %1474 = vrot.lane.b32.xlu2 %v3101_v53, %s2509_s19  ;;  %1470 = vrot.lane.b32.xlu1 %v3004_v7, %s2509_s19  ;;  %v1282_v45 = vmul.f32 %v2461_v34, %v1250_v13  ;;  %v1167_v36 = vmul.f32 %v3557_v43, %v1124_v8 }
 0x1b9   : > { %v2465_v20 = vpop.eup %2464  ;;  %v783_v25 = vadd.f32 1.0, %v2463_v58  ;;  %1466 = vrot.lane.b32.xlu0 %v2929_v47, %s2509_s19  ;;  %v1200_v54 = vadd.f32 %v1168_v30, %v1007_v56  ;;  %v1185_v13 = vadd.f32 %v1153_v6, %v992_v61 }
 0x1ba   : > { %v2467_v26 = vpop.eup %2466  ;;  %2470 = vpow2.f32 %v751_v59  ;;  %v1233_v11 = vmul.f32 %v3568_v2, %v2465_v20  ;;  %v3608_v3 = vadd.f32 %v1282_v45, %v1184_v55  ;;  %v1199_v4 = vadd.f32 %v1167_v36, %v1006_v14  ;;  %v4223_v36 = vld [vmem:[#allocation11_spill] sm:$0xff] }
 0x1bb   : > { %v2469_v34 = vpop.eup %2468  ;;  %2472 = vrcp.f32 %v783_v25  ;;  %v768_v32 = vadd.f32 1.0, %v2467_v26  ;;  %v1169_v45 = vmul.f32 %v3557_v43, %v3437_v63  ;;  %v4224_v26 = vld [vmem:[#allocation18_spill] sm:$0xff] }
 0x1bc   : > { %v1266_v31 = vadd.f32 %v3579_v60, %v1233_v11  ;;  %v1431_v17 = vpop.permute.xlu0 %1430  ;;  %v1218_v52 = vmul.f32 %v3568_v2, %v2469_v34  ;;  %1379 = vst.msk [vmem:[%s2996_s10 + $0x68] sm:$0xff] %vm1333_vm1, %v3608_v3  ;;  %v3621_v21 = vadd.f32 %v1297_v27, %v1199_v4  ;;  %v1008_v27 = vmul.f32 %v3585_v10, %v4223_v36 }
 0x1bd   : > { %2474 = vrcp.f32 %v768_v32  ;;  %2172 = vst.msk [vmem:[%s2878_s18 + $0x100] sm:$0xff] %vm1333_vm1, %v1431_v17  ;;  %v1154_v11 = vmul.f32 %v3557_v43, %v4224_v26  ;;  %v4225_v32 = vld [vmem:[#allocation2_spill] sm:$0xff]  ;;  %v4231_v26 = vld [vmem:[#allocation19_spill] sm:$0xff] }
 0x1be   : > { %v1298_v42 = vmul.f32 %v2465_v20, %v1266_v31  ;;  %v1251_v19 = vadd.f32 %v3579_v60, %v1218_v52  ;;  %1394 = vst.msk [vmem:[%s2996_s10 + $0xe0] sm:$0xff] %vm1333_vm1, %v3621_v21  ;;  %v993_v4 = vmul.f32 %v3585_v10, %v4225_v32  ;;  %v1201_v56 = vadd.f32 %v1169_v45, %v1008_v27  ;;  %v4230_v27 = vld [vmem:[#allocation21_spill] sm:$0xff]  ;;  %v4235_v32 = vld [vmem:[#allocation15_spill] sm:$0xff] }
 0x1bf   : > { %v1136_v55 = vpop.permute.xlu1 %1135 }
 0x1c0   : > { %v2471_v40 = vpop.eup %2470  ;;  %v3629_v58 = vadd.f32 %v1298_v42, %v1200_v54  ;;  %1480 = vrot.lane.b32.xlu2 %v3225_v35, %s2509_s19  ;;  %1476 = vrot.lane.b32.xlu1 %v3115_v44, %s2509_s19  ;;  %v1283_v49 = vmul.f32 %v2469_v34, %v1251_v19  ;;  %v1186_v17 = vadd.f32 %v1154_v11, %v993_v4  ;;  %v4226_v19 = vld [vmem:[#allocation20_spill] sm:$0xff]  ;;  %v4232_v11 = vld [vmem:[#allocation9_spill] sm:$0xff] }
 0x1c1   : > { %v2473_v59 = vpop.eup %2472  ;;  %v784_v8 = vadd.f32 1.0, %v2471_v40  ;;  %1472 = vrot.lane.b32.xlu0 %v3027_v5, %s2509_s19  ;;  %v1170_v40 = vmul.f32 %v3557_v43, %v1136_v55 }
 0x1c2   : > { %1395 = vst.msk [vmem:[%s2996_s10 + $0xe8] sm:$0xff] %vm1333_vm1, %v3629_v58  ;;  %v3642_v20 = vadd.f32 %v1283_v49, %v1185_v13  ;;  %v1234_v14 = vmul.f32 %v3568_v2, %v2473_v59 }
 0x1c3   : > { %v2475_v25 = vpop.eup %2474  ;;  %2476 = vrcp.f32 %v784_v8  ;;  %v4227_v8 = vld [vmem:[#allocation6_spill] sm:$0xff] }
 0x1c4   : > { %v1437_v30 = vpop.permute.xlu0 %1436  ;;  %1380 = vst.msk [vmem:[%s2996_s10 + $0x70] sm:$0xff] %vm1333_vm1, %v3642_v20  ;;  %v1219_v63 = vmul.f32 %v3568_v2, %v2475_v25  ;;  %v1267_v34 = vadd.f32 %v3579_v60, %v1234_v14  ;;  %v1009_v45 = vmul.f32 %v3585_v10, %v4227_v8 }
 0x1c5   : > { %2175 = vst.msk [vmem:[%s2878_s18 + $0x118] sm:$0xff] %vm1333_vm1, %v1437_v30 }
 0x1c6   : > { %v1252_v6 = vadd.f32 %v3579_v60, %v1219_v63  ;;  %v1299_v31 = vmul.f32 %v2473_v59, %v1267_v34  ;;  %v1202_v55 = vadd.f32 %v1170_v40, %v1009_v45  ;;  %v4233_v63 = vld [vmem:[#allocation23_spill] sm:$0xff]  ;;  %v4234_v34 = vld [vmem:[#allocation29_spill] sm:$0xff] }
 0x1c7   : > { %v1435_v52 = vpop.permute.xlu1 %1434  ;;  %v4240_v45 = vld [vmem:[#allocation31_spill] sm:$0xff] }
 0x1c8   : > { %1486 = vrot.lane.b32.xlu2 %v3387_v41, %s2509_s19  ;;  %1482 = vrot.lane.b32.xlu1 %v3281_v33, %s2509_s19  ;;  %v1284_v61 = vmul.f32 %v2475_v25, %v1252_v6  ;;  %v3663_v42 = vadd.f32 %v1299_v31, %v1201_v56  ;;  %2174 = vst.msk [vmem:[%s2878_s18 + $0x110] sm:$0xff] %vm1333_vm1, %v1435_v52  ;;  %v4229_v25 = vld [vmem:[#allocation16_spill] sm:$0xff]  ;;  %v4236_v56 = vld [vmem:[#allocation26_spill] sm:$0xff] }
 0x1c9   : > { %v2477_v54 = vpop.eup %2476  ;;  %1478 = vrot.lane.b32.xlu0 %v4226_v19, %s2509_s19  ;;  %v1445_v13 = vpop.permute.xlu2 %1444 }
 0x1ca   : > { %v3670_v49 = vadd.f32 %v1284_v61, %v1186_v17  ;;  %1396 = vst.msk [vmem:[%s2996_s10 + $0xf0] sm:$0xff] %vm1333_vm1, %v3663_v42  ;;  %v1235_v59 = vmul.f32 %v3568_v2, %v2477_v54  ;;  %v4237_v61 = vld [vmem:[#allocation25_spill] sm:$0xff] }
 0x1cb   : > { %2179 = vst.msk [vmem:[%s2878_s18 + $0x138] sm:$0xff] %vm1333_vm1, %v1445_v13 }
 0x1cc   : > { %1381 = vst.msk [vmem:[%s2996_s10 + $0x78] sm:$0xff] %vm1333_vm1, %v3670_v49  ;;  %v1268_v43 = vadd.f32 %v3579_v60, %v1235_v59  ;;  %v4228_v60 = vld [vmem:[#allocation13_spill] sm:$0xff]  ;;  %v4239_v59 = vld [vmem:[#allocation28_spill] sm:$0xff] }
 0x1ce   : > { %v1300_v14 = vmul.f32 %v2477_v54, %v1268_v43  ;;  %v4238_v54 = vld [vmem:[#allocation32_spill] sm:$0xff] }
 0x1d0   : > { %1492 = vrot.lane.b32.xlu2 %v3563_v9, %s2509_s19  ;;  %1488 = vrot.lane.b32.xlu1 %v3450_v0, %s2509_s19  ;;  %v3688_v2 = vadd.f32 %v1300_v14, %v1202_v55 }
 0x1d1   : > { %1484 = vrot.lane.b32.xlu0 %v3342_v39, %s2509_s19  ;;  %v1441_v10 = vpop.permute.xlu1 %1440 }
 0x1d2   : > { %1397 = vst.msk [vmem:[%s2996_s10 + $0xf8] sm:$0xff] %vm1333_vm1, %v3688_v2 }
 0x1d3   : > { %2177 = vst.msk [vmem:[%s2878_s18 + $0x128] sm:$0xff] %vm1333_vm1, %v1441_v10 }
 0x1d8   : > { %1591 = vrot.lane.b32.xlu1 %v4228_v60, %s2509_s19  ;;  %1595 = vrot.lane.b32.xlu2 %v4229_v25, %s2509_s19 }
 0x1d9   : > { %1490 = vrot.lane.b32.xlu0 %v3505_v62, %s2509_s19  ;;  %v1443_v36 = vpop.permute.xlu0 %1442 }
 0x1da   : > { %2178 = vst.msk [vmem:[%s2878_s18 + $0x130] sm:$0xff] %vm1333_vm1, %v1443_v36 }
 0x1e0   : > { %1601 = vrot.lane.b32.xlu2 %v4230_v27, %s2509_s19  ;;  %1597 = vrot.lane.b32.xlu1 %v4231_v26, %s2509_s19 }
 0x1e1   : > { %1593 = vrot.lane.b32.xlu0 %v4232_v11, %s2509_s19 }
 0x1e2   : > { %v1451_v30 = vpop.permute.xlu2 %1450 }
 0x1e3   : > { %2182 = vst.msk [vmem:[%s2878_s18 + $0x150] sm:$0xff] %vm1333_vm1, %v1451_v30  ;;  %v4241_v30 = vld [vmem:[#allocation3_spill] sm:$0xff] }
 0x1e8   : > { %1603 = vrot.lane.b32.xlu1 %v4233_v63, %s2509_s19  ;;  %1607 = vrot.lane.b32.xlu2 %v4234_v34, %s2509_s19 }
 0x1e9   : > { %1599 = vrot.lane.b32.xlu0 %v4235_v32, %s2509_s19 }
 0x1ea   : > { %v1447_v4 = vpop.permute.xlu1 %1446 }
 0x1eb   : > { %2180 = vst.msk [vmem:[%s2878_s18 + $0x140] sm:$0xff] %vm1333_vm1, %v1447_v4 }
 0x1f0   : > { %1609 = vrot.lane.b32.xlu1 %v3379_v57, %s2509_s19  ;;  %1613 = vrot.lane.b32.xlu2 %v3499_v50, %s2509_s19 }
 0x1f1   : > { %1605 = vrot.lane.b32.xlu0 %v4236_v56, %s2509_s19 }
 0x1f2   : > { %v1449_v6 = vpop.permute.xlu0 %1448 }
 0x1f3   : > { %2181 = vst.msk [vmem:[%s2878_s18 + $0x148] sm:$0xff] %vm1333_vm1, %v1449_v6 }
 0x1f8   : > { %1615 = vrot.lane.b32.xlu1 %v3548_v15, %s2509_s19  ;;  %1619 = vrot.lane.b32.xlu2 %v3642_v20, %s2509_s19 }
 0x1f9   : > { %1611 = vrot.lane.b32.xlu0 %v3445_v1, %s2509_s19 }
 0x1fa   : > { %v1457_v31 = vpop.permute.xlu2 %1456 }
 0x1fb   : > { %2185 = vst.msk [vmem:[%s2878_s18 + $0x168] sm:$0xff] %vm1333_vm1, %v1457_v31 }
 0x200   : > { %1621 = vrot.lane.b32.xlu1 %v3670_v49, %s2509_s19  ;;  %1625 = vrot.lane.b32.xlu2 %v3370_v28, %s2509_s19 }
 0x201   : > { %1617 = vrot.lane.b32.xlu0 %v3608_v3, %s2509_s19 }
 0x202   : > { %v1453_v17 = vpop.permute.xlu1 %1452  ;;  %v1463_v52 = vpop.permute.xlu2 %1462 }
 0x203   : > { %2183 = vst.msk [vmem:[%s2878_s18 + $0x158] sm:$0xff] %vm1333_vm1, %v1453_v17  ;;  %v4242_v17 = vld [vmem:[#allocation4_spill] sm:$0xff] }
 0x204   : > { %2188 = vst.msk [vmem:[%s2878_s18 + $0x180] sm:$0xff] %vm1333_vm1, %v1463_v52  ;;  %v4243_v52 = vld [vmem:[#allocation7_spill] sm:$0xff] }
 0x208   : > { %1627 = vrot.lane.b32.xlu1 %v4237_v61, %s2509_s19  ;;  %1631 = vrot.lane.b32.xlu2 %v3434_v16, %s2509_s19 }
 0x209   : > { %1623 = vrot.lane.b32.xlu0 %v4238_v54, %s2509_s19 }
 0x20a   : > { %v1469_v40 = vpop.permute.xlu2 %1468  ;;  %v1455_v13 = vpop.permute.xlu0 %1454 }
 0x20b   : > { %2191 = vst.msk [vmem:[%s2878_s18 + $0x198] sm:$0xff] %vm1333_vm1, %v1469_v40 }
 0x20c   : > { %2184 = vst.msk [vmem:[%s2878_s18 + $0x160] sm:$0xff] %vm1333_vm1, %v1455_v13 }
 0x210   : > { %1633 = vrot.lane.b32.xlu1 %v4239_v59, %s2509_s19  ;;  %1637 = vrot.lane.b32.xlu2 %v3488_v48, %s2509_s19 }
 0x211   : > { %1629 = vrot.lane.b32.xlu0 %v3459_v23, %s2509_s19 }
 0x212   : > { %v1475_v8 = vpop.permute.xlu2 %1474 }
 0x213   : > { %2194 = vst.msk [vmem:[%s2878_s18 + $0x1b0] sm:$0xff] %vm1333_vm1, %v1475_v8 }
 0x218   : > { %1639 = vrot.lane.b32.xlu1 %v4240_v45, %s2509_s19  ;;  %1643 = vrot.lane.b32.xlu2 %v3539_v51, %s2509_s19 }
 0x219   : > { %1635 = vrot.lane.b32.xlu0 %v3513_v24, %s2509_s19 }
 0x21a   : > { %v1481_v43 = vpop.permute.xlu2 %1480  ;;  %v1459_v55 = vpop.permute.xlu1 %1458 }
 0x21b   : > { %2197 = vst.msk [vmem:[%s2878_s18 + $0x1c8] sm:$0xff] %vm1333_vm1, %v1481_v43  ;;  %v4244_v43 = vld [vmem:[#allocation8_spill] sm:$0xff] }
 0x21c   : > { %2186 = vst.msk [vmem:[%s2878_s18 + $0x170] sm:$0xff] %vm1333_vm1, %v1459_v55  ;;  %v4245_v55 = vld [vmem:[#allocation12_spill] sm:$0xff] }
 0x220   : > { %1645 = vrot.lane.b32.xlu1 %v3529_v37, %s2509_s19  ;;  %1649 = vrot.lane.b32.xlu2 %v3629_v58, %s2509_s19 }
 0x221   : > { %1641 = vrot.lane.b32.xlu0 %v3574_v12, %s2509_s19 }
 0x222   : > { %v1487_v14 = vpop.permute.xlu2 %1486  ;;  %v1465_v10 = vpop.permute.xlu1 %1464 }
 0x223   : > { %2200 = vst.msk [vmem:[%s2878_s18 + $0x1e0] sm:$0xff] %vm1333_vm1, %v1487_v14  ;;  %v1461_v36 = vpop.permute.xlu0 %1460  ;;  %v4246_v14 = vld [vmem:[#allocation5_spill] sm:$0xff] }
 0x224   : > { %2189 = vst.msk [vmem:[%s2878_s18 + $0x188] sm:$0xff] %vm1333_vm1, %v1465_v10 }
 0x225   : > { %2187 = vst.msk [vmem:[%s2878_s18 + $0x178] sm:$0xff] %vm1333_vm1, %v1461_v36 }
 0x228   : > { %1651 = vrot.lane.b32.xlu1 %v3663_v42, %s2509_s19  ;;  %1720 = vrot.lane.b32.xlu2 %v4241_v30, %s2510_s26 }
 0x229   : > { %1647 = vrot.lane.b32.xlu0 %v3621_v21, %s2509_s19 }
 0x22a   : > { %v1493_v4 = vpop.permute.xlu2 %1492  ;;  %v1471_v6 = vpop.permute.xlu1 %1470 }
 0x22b   : > { %2203 = vst.msk [vmem:[%s2878_s18 + $0x1f8] sm:$0xff] %vm1333_vm1, %v1493_v4  ;;  %v1467_v31 = vpop.permute.xlu0 %1466  ;;  %v4247_v4 = vld [vmem:[#allocation14_spill] sm:$0xff] }
 0x22c   : > { %2192 = vst.msk [vmem:[%s2878_s18 + $0x1a0] sm:$0xff] %vm1333_vm1, %v1471_v6  ;;  %v4248_v6 = vld [vmem:[#allocation22_spill] sm:$0xff] }
 0x22d   : > { %2190 = vst.msk [vmem:[%s2878_s18 + $0x190] sm:$0xff] %vm1333_vm1, %v1467_v31  ;;  %v4249_v31 = vld [vmem:[#allocation10_spill] sm:$0xff] }
 0x230   : > { %1722 = vrot.lane.b32.xlu1 %v4242_v17, %s2510_s26  ;;  %1726 = vrot.lane.b32.xlu2 %v4243_v52, %s2510_s26 }
 0x231   : > { %1653 = vrot.lane.b32.xlu0 %v3688_v2, %s2509_s19 }
 0x232   : > { %v1477_v40 = vpop.permute.xlu1 %1476  ;;  %v1596_v13 = vpop.permute.xlu2 %1595 }
 0x233   : > { %2195 = vst.msk [vmem:[%s2878_s18 + $0x1b8] sm:$0xff] %vm1333_vm1, %v1477_v40  ;;  %v1473_v8 = vpop.permute.xlu0 %1472 }
 0x234   : > { %2206 = vst.msk [vmem:[%s2996_s10 + $0x110] sm:$0xff] %vm1333_vm1, %v1596_v13  ;;  %v4250_v13 = vld [vmem:[#allocation24_spill] sm:$0xff] }
 0x235   : > { %2193 = vst.msk [vmem:[%s2878_s18 + $0x1a8] sm:$0xff] %vm1333_vm1, %v1473_v8  ;;  %v4251_v8 = vld [vmem:[#allocation30_spill] sm:$0xff] }
 0x238   : > { %1728 = vrot.lane.b32.xlu1 %v4244_v43, %s2510_s26  ;;  %1732 = vrot.lane.b32.xlu2 %v4245_v55, %s2510_s26  ;;  %v4252_v43 = vld [vmem:[#allocation17_spill] sm:$0xff] }
 0x239   : > { %1724 = vrot.lane.b32.xlu0 %v4246_v14, %s2510_s26 }
 0x23a   : > { %v1483_v10 = vpop.permute.xlu1 %1482  ;;  %v1602_v36 = vpop.permute.xlu2 %1601 }
 0x23b   : > { %2198 = vst.msk [vmem:[%s2878_s18 + $0x1d0] sm:$0xff] %vm1333_vm1, %v1483_v10  ;;  %v1479_v30 = vpop.permute.xlu0 %1478 }
 0x23c   : > { %2209 = vst.msk [vmem:[%s2996_s10 + $0x128] sm:$0xff] %vm1333_vm1, %v1602_v36  ;;  %v4253_v36 = vld [vmem:[#allocation33_spill] sm:$0xff] }
 0x23d   : > { %2196 = vst.msk [vmem:[%s2878_s18 + $0x1c0] sm:$0xff] %vm1333_vm1, %v1479_v30  ;;  %v4254_v30 = vld [vmem:[#allocation27_spill] sm:$0xff] }
 0x240   : > { %1734 = vrot.lane.b32.xlu1 %v4247_v4, %s2510_s26  ;;  %1738 = vrot.lane.b32.xlu2 %v4248_v6, %s2510_s26 }
 0x241   : > { %1730 = vrot.lane.b32.xlu0 %v4249_v31, %s2510_s26 }
 0x242   : > { %v1489_v17 = vpop.permute.xlu1 %1488  ;;  %v1608_v52 = vpop.permute.xlu2 %1607 }
 0x243   : > { %2201 = vst.msk [vmem:[%s2878_s18 + $0x1e8] sm:$0xff] %vm1333_vm1, %v1489_v17  ;;  %v1485_v40 = vpop.permute.xlu0 %1484 }
 0x244   : > { %2212 = vst.msk [vmem:[%s2996_s10 + $0x140] sm:$0xff] %vm1333_vm1, %v1608_v52 }
 0x245   : > { %2199 = vst.msk [vmem:[%s2878_s18 + $0x1d8] sm:$0xff] %vm1333_vm1, %v1485_v40 }
 0x248   : > { %1740 = vrot.lane.b32.xlu1 %v4250_v13, %s2510_s26  ;;  %1744 = vrot.lane.b32.xlu2 %v4251_v8, %s2510_s26 }
 0x249   : > { %1736 = vrot.lane.b32.xlu0 %v4252_v43, %s2510_s26 }
 0x24a   : > { %v1592_v55 = vpop.permute.xlu1 %1591  ;;  %v1614_v14 = vpop.permute.xlu2 %1613 }
 0x24b   : > { %2204 = vst.msk [vmem:[%s2996_s10 + $0x100] sm:$0xff] %vm1333_vm1, %v1592_v55  ;;  %v1491_v10 = vpop.permute.xlu0 %1490 }
 0x24c   : > { %2215 = vst.msk [vmem:[%s2996_s10 + $0x158] sm:$0xff] %vm1333_vm1, %v1614_v14 }
 0x24d   : > { %2202 = vst.msk [vmem:[%s2878_s18 + $0x1f0] sm:$0xff] %vm1333_vm1, %v1491_v10 }
 0x250   : > { %1746 = vrot.lane.b32.xlu1 %v4253_v36, %s2510_s26  ;;  %1750 = vrot.lane.b32.xlu2 %v3519_v29, %s2510_s26 }
 0x251   : > { %1742 = vrot.lane.b32.xlu0 %v4254_v30, %s2510_s26 }
 0x252   : > { %v1598_v4 = vpop.permute.xlu1 %1597  ;;  %v1620_v6 = vpop.permute.xlu2 %1619 }
 0x253   : > { %2207 = vst.msk [vmem:[%s2996_s10 + $0x118] sm:$0xff] %vm1333_vm1, %v1598_v4  ;;  %v1594_v31 = vpop.permute.xlu0 %1593 }
 0x254   : > { %2218 = vst.msk [vmem:[%s2996_s10 + $0x170] sm:$0xff] %vm1333_vm1, %v1620_v6 }
 0x255   : > { %2205 = vst.msk [vmem:[%s2996_s10 + $0x108] sm:$0xff] %vm1333_vm1, %v1594_v31 }
 0x258   : > { %1752 = vrot.lane.b32.xlu1 %v2892_v38, %s2510_s26  ;;  %1756 = vrot.lane.b32.xlu2 %v2929_v47, %s2510_s26 }
 0x259   : > { %1748 = vrot.lane.b32.xlu0 %v3468_v22, %s2510_s26 }
 0x25a   : > { %v1604_v29 = vpop.permute.xlu1 %1603  ;;  %v1626_v17 = vpop.permute.xlu2 %1625 }
 0x25b   : > { %2210 = vst.msk [vmem:[%s2996_s10 + $0x130] sm:$0xff] %vm1333_vm1, %v1604_v29  ;;  %v1600_v52 = vpop.permute.xlu0 %1599 }
 0x25c   : > { %2221 = vst.msk [vmem:[%s2996_s10 + $0x188] sm:$0xff] %vm1333_vm1, %v1626_v17 }
 0x25d   : > { %2208 = vst.msk [vmem:[%s2996_s10 + $0x120] sm:$0xff] %vm1333_vm1, %v1600_v52 }
 0x260   : > { %1758 = vrot.lane.b32.xlu1 %v2964_v18, %s2510_s26  ;;  %1762 = vrot.lane.b32.xlu2 %v3027_v5, %s2510_s26 }
 0x261   : > { %1754 = vrot.lane.b32.xlu0 %v2911_v46, %s2510_s26 }
 0x262   : > { %v1610_v38 = vpop.permute.xlu1 %1609  ;;  %v1632_v47 = vpop.permute.xlu2 %1631 }
 0x263   : > { %2213 = vst.msk [vmem:[%s2996_s10 + $0x148] sm:$0xff] %vm1333_vm1, %v1610_v38  ;;  %v1606_v22 = vpop.permute.xlu0 %1605 }
 0x264   : > { %2224 = vst.msk [vmem:[%s2996_s10 + $0x1a0] sm:$0xff] %vm1333_vm1, %v1632_v47 }
 0x265   : > { %2211 = vst.msk [vmem:[%s2996_s10 + $0x138] sm:$0xff] %vm1333_vm1, %v1606_v22 }
 0x268   : > { %1764 = vrot.lane.b32.xlu1 %v3101_v53, %s2510_s26  ;;  %1768 = vrot.lane.b32.xlu2 %v4226_v19, %s2510_s26 }
 0x269   : > { %1760 = vrot.lane.b32.xlu0 %v3004_v7, %s2510_s26 }
 0x26a   : > { %v1616_v46 = vpop.permute.xlu1 %1615  ;;  %v1638_v18 = vpop.permute.xlu2 %1637 }
 0x26b   : > { %2216 = vst.msk [vmem:[%s2996_s10 + $0x160] sm:$0xff] %vm1333_vm1, %v1616_v46  ;;  %v1612_v5 = vpop.permute.xlu0 %1611 }
 0x26c   : > { %2227 = vst.msk [vmem:[%s2996_s10 + $0x1b8] sm:$0xff] %vm1333_vm1, %v1638_v18 }
 0x26d   : > { %2214 = vst.msk [vmem:[%s2996_s10 + $0x150] sm:$0xff] %vm1333_vm1, %v1612_v5 }
 0x270   : > { %1770 = vrot.lane.b32.xlu1 %v3225_v35, %s2510_s26  ;;  %1774 = vrot.lane.b32.xlu2 %v3342_v39, %s2510_s26 }
 0x271   : > { %1766 = vrot.lane.b32.xlu0 %v3115_v44, %s2510_s26 }
 0x272   : > { %v1622_v7 = vpop.permute.xlu1 %1621  ;;  %v1644_v53 = vpop.permute.xlu2 %1643 }
 0x273   : > { %2219 = vst.msk [vmem:[%s2996_s10 + $0x178] sm:$0xff] %vm1333_vm1, %v1622_v7  ;;  %v1618_v19 = vpop.permute.xlu0 %1617 }
 0x274   : > { %2230 = vst.msk [vmem:[%s2996_s10 + $0x1d0] sm:$0xff] %vm1333_vm1, %v1644_v53 }
 0x275   : > { %2217 = vst.msk [vmem:[%s2996_s10 + $0x168] sm:$0xff] %vm1333_vm1, %v1618_v19 }
 0x278   : > { %1776 = vrot.lane.b32.xlu1 %v3387_v41, %s2510_s26  ;;  %1780 = vrot.lane.b32.xlu2 %v3505_v62, %s2510_s26 }
 0x279   : > { %1772 = vrot.lane.b32.xlu0 %v3281_v33, %s2510_s26 }
 0x27a   : > { %v1628_v44 = vpop.permute.xlu1 %1627  ;;  %v1650_v35 = vpop.permute.xlu2 %1649 }
 0x27b   : > { %2222 = vst.msk [vmem:[%s2996_s10 + $0x190] sm:$0xff] %vm1333_vm1, %v1628_v44  ;;  %v1624_v39 = vpop.permute.xlu0 %1623 }
 0x27c   : > { %2233 = vst.msk [vmem:[%s2996_s10 + $0x1e8] sm:$0xff] %vm1333_vm1, %v1650_v35 }
 0x27d   : > { %2220 = vst.msk [vmem:[%s2996_s10 + $0x180] sm:$0xff] %vm1333_vm1, %v1624_v39 }
 0x280   : > { %1782 = vrot.lane.b32.xlu1 %v3563_v9, %s2510_s26  ;;  %1851 = vrot.lane.b32.xlu2 %v4232_v11, %s2510_s26 }
 0x281   : > { %1778 = vrot.lane.b32.xlu0 %v3450_v0, %s2510_s26 }
 0x282   : > { %v1634_v33 = vpop.permute.xlu1 %1633  ;;  %v1721_v41 = vpop.permute.xlu2 %1720 }
 0x283   : > { %2225 = vst.msk [vmem:[%s2996_s10 + $0x1a8] sm:$0xff] %vm1333_vm1, %v1634_v33  ;;  %v1630_v62 = vpop.permute.xlu0 %1629 }
 0x284   : > { %2236 = vst.msk [vmem:[%s2878_s18 + $0x200] sm:$0xff] %vm1333_vm1, %v1721_v41 }
 0x285   : > { %2223 = vst.msk [vmem:[%s2996_s10 + $0x198] sm:$0xff] %vm1333_vm1, %v1630_v62 }
 0x288   : > { %1853 = vrot.lane.b32.xlu1 %v4229_v25, %s2510_s26  ;;  %1857 = vrot.lane.b32.xlu2 %v4235_v32, %s2510_s26 }
 0x289   : > { %1849 = vrot.lane.b32.xlu0 %v4228_v60, %s2510_s26 }
 0x28a   : > { %v1640_v0 = vpop.permute.xlu1 %1639  ;;  %v1727_v9 = vpop.permute.xlu2 %1726 }
 0x28b   : > { %2228 = vst.msk [vmem:[%s2996_s10 + $0x1c0] sm:$0xff] %vm1333_vm1, %v1640_v0  ;;  %v1636_v11 = vpop.permute.xlu0 %1635 }
 0x28c   : > { %2239 = vst.msk [vmem:[%s2878_s18 + $0x218] sm:$0xff] %vm1333_vm1, %v1727_v9 }
 0x28d   : > { %2226 = vst.msk [vmem:[%s2996_s10 + $0x1b0] sm:$0xff] %vm1333_vm1, %v1636_v11 }
 0x290   : > { %1859 = vrot.lane.b32.xlu1 %v4230_v27, %s2510_s26  ;;  %1863 = vrot.lane.b32.xlu2 %v4236_v56, %s2510_s26 }
 0x291   : > { %1855 = vrot.lane.b32.xlu0 %v4231_v26, %s2510_s26 }
 0x292   : > { %v1646_v60 = vpop.permute.xlu1 %1645  ;;  %v1733_v25 = vpop.permute.xlu2 %1732 }
 0x293   : > { %2231 = vst.msk [vmem:[%s2996_s10 + $0x1d8] sm:$0xff] %vm1333_vm1, %v1646_v60  ;;  %v1642_v32 = vpop.permute.xlu0 %1641 }
 0x294   : > { %2242 = vst.msk [vmem:[%s2878_s18 + $0x230] sm:$0xff] %vm1333_vm1, %v1733_v25 }
 0x295   : > { %2229 = vst.msk [vmem:[%s2996_s10 + $0x1c8] sm:$0xff] %vm1333_vm1, %v1642_v32 }
 0x298   : > { %1865 = vrot.lane.b32.xlu1 %v4234_v34, %s2510_s26  ;;  %1869 = vrot.lane.b32.xlu2 %v3445_v1, %s2510_s26 }
 0x299   : > { %1861 = vrot.lane.b32.xlu0 %v4233_v63, %s2510_s26 }
 0x29a   : > { %v1652_v27 = vpop.permute.xlu1 %1651  ;;  %v1739_v26 = vpop.permute.xlu2 %1738 }
 0x29b   : > { %2234 = vst.msk [vmem:[%s2996_s10 + $0x1f0] sm:$0xff] %vm1333_vm1, %v1652_v27  ;;  %v1648_v56 = vpop.permute.xlu0 %1647 }
 0x29c   : > { %2245 = vst.msk [vmem:[%s2878_s18 + $0x248] sm:$0xff] %vm1333_vm1, %v1739_v26 }
 0x29d   : > { %2232 = vst.msk [vmem:[%s2996_s10 + $0x1e0] sm:$0xff] %vm1333_vm1, %v1648_v56 }
 0x2a0   : > { %1871 = vrot.lane.b32.xlu1 %v3499_v50, %s2510_s26  ;;  %1875 = vrot.lane.b32.xlu2 %v3608_v3, %s2510_s26 }
 0x2a1   : > { %1867 = vrot.lane.b32.xlu0 %v3379_v57, %s2510_s26 }
 0x2a2   : > { %v1723_v1 = vpop.permute.xlu1 %1722  ;;  %v1745_v63 = vpop.permute.xlu2 %1744 }
 0x2a3   : > { %2237 = vst.msk [vmem:[%s2878_s18 + $0x208] sm:$0xff] %vm1333_vm1, %v1723_v1  ;;  %v1654_v34 = vpop.permute.xlu0 %1653 }
 0x2a4   : > { %2248 = vst.msk [vmem:[%s2878_s18 + $0x260] sm:$0xff] %vm1333_vm1, %v1745_v63 }
 0x2a5   : > { %2235 = vst.msk [vmem:[%s2996_s10 + $0x1f8] sm:$0xff] %vm1333_vm1, %v1654_v34 }
 0x2a8   : > { %1877 = vrot.lane.b32.xlu1 %v3642_v20, %s2510_s26  ;;  %1881 = vrot.lane.b32.xlu2 %v4238_v54, %s2510_s26 }
 0x2a9   : > { %1873 = vrot.lane.b32.xlu0 %v3548_v15, %s2510_s26 }
 0x2aa   : > { %v1729_v57 = vpop.permute.xlu1 %1728  ;;  %v1751_v50 = vpop.permute.xlu2 %1750 }
 0x2ab   : > { %2240 = vst.msk [vmem:[%s2878_s18 + $0x220] sm:$0xff] %vm1333_vm1, %v1729_v57  ;;  %v1725_v3 = vpop.permute.xlu0 %1724 }
 0x2ac   : > { %2251 = vst.msk [vmem:[%s2878_s18 + $0x278] sm:$0xff] %vm1333_vm1, %v1751_v50 }
 0x2ad   : > { %2238 = vst.msk [vmem:[%s2878_s18 + $0x210] sm:$0xff] %vm1333_vm1, %v1725_v3 }
 0x2b0   : > { %1883 = vrot.lane.b32.xlu1 %v3370_v28, %s2510_s26  ;;  %1887 = vrot.lane.b32.xlu2 %v3459_v23, %s2510_s26 }
 0x2b1   : > { %1879 = vrot.lane.b32.xlu0 %v3670_v49, %s2510_s26 }
 0x2b2   : > { %v1735_v15 = vpop.permute.xlu1 %1734  ;;  %v1757_v20 = vpop.permute.xlu2 %1756 }
 0x2b3   : > { %2243 = vst.msk [vmem:[%s2878_s18 + $0x238] sm:$0xff] %vm1333_vm1, %v1735_v15  ;;  %v1731_v54 = vpop.permute.xlu0 %1730 }
 0x2b4   : > { %2254 = vst.msk [vmem:[%s2878_s18 + $0x290] sm:$0xff] %vm1333_vm1, %v1757_v20 }
 0x2b5   : > { %2241 = vst.msk [vmem:[%s2878_s18 + $0x228] sm:$0xff] %vm1333_vm1, %v1731_v54 }
 0x2b8   : > { %1889 = vrot.lane.b32.xlu1 %v3434_v16, %s2510_s26  ;;  %1893 = vrot.lane.b32.xlu2 %v3513_v24, %s2510_s26 }
 0x2b9   : > { %1885 = vrot.lane.b32.xlu0 %v4237_v61, %s2510_s26 }
 0x2ba   : > { %v1741_v28 = vpop.permute.xlu1 %1740  ;;  %v1763_v23 = vpop.permute.xlu2 %1762 }
 0x2bb   : > { %2246 = vst.msk [vmem:[%s2878_s18 + $0x250] sm:$0xff] %vm1333_vm1, %v1741_v28  ;;  %v1737_v49 = vpop.permute.xlu0 %1736 }
 0x2bc   : > { %2257 = vst.msk [vmem:[%s2878_s18 + $0x2a8] sm:$0xff] %vm1333_vm1, %v1763_v23 }
 0x2bd   : > { %2244 = vst.msk [vmem:[%s2878_s18 + $0x240] sm:$0xff] %vm1333_vm1, %v1737_v49 }
 0x2c0   : > { %1895 = vrot.lane.b32.xlu1 %v3488_v48, %s2510_s26  ;;  %1899 = vrot.lane.b32.xlu2 %v3574_v12, %s2510_s26 }
 0x2c1   : > { %1891 = vrot.lane.b32.xlu0 %v4239_v59, %s2510_s26 }
 0x2c2   : > { %v1747_v16 = vpop.permute.xlu1 %1746  ;;  %v1769_v24 = vpop.permute.xlu2 %1768 }
 0x2c3   : > { %2249 = vst.msk [vmem:[%s2878_s18 + $0x268] sm:$0xff] %vm1333_vm1, %v1747_v16  ;;  %v1743_v61 = vpop.permute.xlu0 %1742 }
 0x2c4   : > { %2260 = vst.msk [vmem:[%s2878_s18 + $0x2c0] sm:$0xff] %vm1333_vm1, %v1769_v24 }
 0x2c5   : > { %2247 = vst.msk [vmem:[%s2878_s18 + $0x258] sm:$0xff] %vm1333_vm1, %v1743_v61 }
 0x2c8   : > { %1901 = vrot.lane.b32.xlu1 %v3539_v51, %s2510_s26  ;;  %1905 = vrot.lane.b32.xlu2 %v3621_v21, %s2510_s26 }
 0x2c9   : > { %1897 = vrot.lane.b32.xlu0 %v4240_v45, %s2510_s26 }
 0x2ca   : > { %v1753_v48 = vpop.permute.xlu1 %1752  ;;  %v1775_v12 = vpop.permute.xlu2 %1774 }
 0x2cb   : > { %2252 = vst.msk [vmem:[%s2878_s18 + $0x280] sm:$0xff] %vm1333_vm1, %v1753_v48  ;;  %v1749_v59 = vpop.permute.xlu0 %1748 }
 0x2cc   : > { %2263 = vst.msk [vmem:[%s2878_s18 + $0x2d8] sm:$0xff] %vm1333_vm1, %v1775_v12 }
 0x2cd   : > { %2250 = vst.msk [vmem:[%s2878_s18 + $0x270] sm:$0xff] %vm1333_vm1, %v1749_v59 }
 0x2d0   : > { %1907 = vrot.lane.b32.xlu1 %v3629_v58, %s2510_s26  ;;  %1911 = vrot.lane.b32.xlu2 %v3688_v2, %s2510_s26 }
 0x2d1   : > { %1903 = vrot.lane.b32.xlu0 %v3529_v37, %s2510_s26 }
 0x2d2   : > { %v1759_v51 = vpop.permute.xlu1 %1758  ;;  %v1781_v21 = vpop.permute.xlu2 %1780 }
 0x2d3   : > { %2255 = vst.msk [vmem:[%s2878_s18 + $0x298] sm:$0xff] %vm1333_vm1, %v1759_v51  ;;  %v1755_v45 = vpop.permute.xlu0 %1754 }
 0x2d4   : > { %2266 = vst.msk [vmem:[%s2878_s18 + $0x2f0] sm:$0xff] %vm1333_vm1, %v1781_v21 }
 0x2d5   : > { %2253 = vst.msk [vmem:[%s2878_s18 + $0x288] sm:$0xff] %vm1333_vm1, %v1755_v45 }
 0x2d9   : > { %1909 = vrot.lane.b32.xlu0 %v3663_v42, %s2510_s26 }
 0x2da   : > { %v1765_v58 = vpop.permute.xlu1 %1764  ;;  %v1852_v2 = vpop.permute.xlu2 %1851 }
 0x2db   : > { %2258 = vst.msk [vmem:[%s2878_s18 + $0x2b0] sm:$0xff] %vm1333_vm1, %v1765_v58  ;;  %v1761_v37 = vpop.permute.xlu0 %1760 }
 0x2dc   : > { %2269 = vst.msk [vmem:[%s2996_s10 + $0x208] sm:$0xff] %vm1333_vm1, %v1852_v2 }
 0x2dd   : > { %2256 = vst.msk [vmem:[%s2878_s18 + $0x2a0] sm:$0xff] %vm1333_vm1, %v1761_v37 }
 0x2e2   : > { %v1771_v40 = vpop.permute.xlu1 %1770  ;;  %v1858_v13 = vpop.permute.xlu2 %1857 }
 0x2e3   : > { %2261 = vst.msk [vmem:[%s2878_s18 + $0x2c8] sm:$0xff] %vm1333_vm1, %v1771_v40  ;;  %v1767_v8 = vpop.permute.xlu0 %1766 }
 0x2e4   : > { %2272 = vst.msk [vmem:[%s2996_s10 + $0x220] sm:$0xff] %vm1333_vm1, %v1858_v13 }
 0x2e5   : > { %2259 = vst.msk [vmem:[%s2878_s18 + $0x2b8] sm:$0xff] %vm1333_vm1, %v1767_v8 }
 0x2ea   : > { %v1777_v42 = vpop.permute.xlu1 %1776  ;;  %v1864_v43 = vpop.permute.xlu2 %1863 }
 0x2eb   : > { %2264 = vst.msk [vmem:[%s2878_s18 + $0x2e0] sm:$0xff] %vm1333_vm1, %v1777_v42  ;;  %v1773_v55 = vpop.permute.xlu0 %1772 }
 0x2ec   : > { %2275 = vst.msk [vmem:[%s2996_s10 + $0x238] sm:$0xff] %vm1333_vm1, %v1864_v43 }
 0x2ed   : > { %2262 = vst.msk [vmem:[%s2878_s18 + $0x2d0] sm:$0xff] %vm1333_vm1, %v1773_v55 }
 0x2f2   : > { %v1783_v14 = vpop.permute.xlu1 %1782  ;;  %v1870_v10 = vpop.permute.xlu2 %1869 }
 0x2f3   : > { %2267 = vst.msk [vmem:[%s2878_s18 + $0x2f8] sm:$0xff] %vm1333_vm1, %v1783_v14  ;;  %v1779_v36 = vpop.permute.xlu0 %1778 }
 0x2f4   : > { %2278 = vst.msk [vmem:[%s2996_s10 + $0x250] sm:$0xff] %vm1333_vm1, %v1870_v10 }
 0x2f5   : > { %2265 = vst.msk [vmem:[%s2878_s18 + $0x2e8] sm:$0xff] %vm1333_vm1, %v1779_v36 }
 0x2fa   : > { %v1854_v30 = vpop.permute.xlu1 %1853  ;;  %v1876_v4 = vpop.permute.xlu2 %1875 }
 0x2fb   : > { %2270 = vst.msk [vmem:[%s2996_s10 + $0x210] sm:$0xff] %vm1333_vm1, %v1854_v30  ;;  %v1850_v6 = vpop.permute.xlu0 %1849 }
 0x2fc   : > { %2281 = vst.msk [vmem:[%s2996_s10 + $0x268] sm:$0xff] %vm1333_vm1, %v1876_v4 }
 0x2fd   : > { %2268 = vst.msk [vmem:[%s2996_s10 + $0x200] sm:$0xff] %vm1333_vm1, %v1850_v6 }
 0x302   : > { %v1860_v31 = vpop.permute.xlu1 %1859  ;;  %v1882_v29 = vpop.permute.xlu2 %1881 }
 0x303   : > { %2273 = vst.msk [vmem:[%s2996_s10 + $0x228] sm:$0xff] %vm1333_vm1, %v1860_v31  ;;  %v1856_v17 = vpop.permute.xlu0 %1855 }
 0x304   : > { %2284 = vst.msk [vmem:[%s2996_s10 + $0x280] sm:$0xff] %vm1333_vm1, %v1882_v29 }
 0x305   : > { %2271 = vst.msk [vmem:[%s2996_s10 + $0x218] sm:$0xff] %vm1333_vm1, %v1856_v17 }
 0x30a   : > { %v1866_v52 = vpop.permute.xlu1 %1865  ;;  %v1888_v38 = vpop.permute.xlu2 %1887 }
 0x30b   : > { %2276 = vst.msk [vmem:[%s2996_s10 + $0x240] sm:$0xff] %vm1333_vm1, %v1866_v52  ;;  %v1862_v47 = vpop.permute.xlu0 %1861 }
 0x30c   : > { %2287 = vst.msk [vmem:[%s2996_s10 + $0x298] sm:$0xff] %vm1333_vm1, %v1888_v38 }
 0x30d   : > { %2274 = vst.msk [vmem:[%s2996_s10 + $0x230] sm:$0xff] %vm1333_vm1, %v1862_v47 }
 0x312   : > { %v1872_v22 = vpop.permute.xlu1 %1871  ;;  %v1894_v46 = vpop.permute.xlu2 %1893 }
 0x313   : > { %2279 = vst.msk [vmem:[%s2996_s10 + $0x258] sm:$0xff] %vm1333_vm1, %v1872_v22  ;;  %v1868_v18 = vpop.permute.xlu0 %1867 }
 0x314   : > { %2290 = vst.msk [vmem:[%s2996_s10 + $0x2b0] sm:$0xff] %vm1333_vm1, %v1894_v46 }
 0x315   : > { %2277 = vst.msk [vmem:[%s2996_s10 + $0x248] sm:$0xff] %vm1333_vm1, %v1868_v18 }
 0x31a   : > { %v1878_v5 = vpop.permute.xlu1 %1877  ;;  %v1900_v7 = vpop.permute.xlu2 %1899 }
 0x31b   : > { %2282 = vst.msk [vmem:[%s2996_s10 + $0x270] sm:$0xff] %vm1333_vm1, %v1878_v5  ;;  %v1874_v53 = vpop.permute.xlu0 %1873 }
 0x31c   : > { %2293 = vst.msk [vmem:[%s2996_s10 + $0x2c8] sm:$0xff] %vm1333_vm1, %v1900_v7 }
 0x31d   : > { %2280 = vst.msk [vmem:[%s2996_s10 + $0x260] sm:$0xff] %vm1333_vm1, %v1874_v53 }
 0x322   : > { %v1884_v19 = vpop.permute.xlu1 %1883  ;;  %v1906_v44 = vpop.permute.xlu2 %1905 }
 0x323   : > { %2285 = vst.msk [vmem:[%s2996_s10 + $0x288] sm:$0xff] %vm1333_vm1, %v1884_v19  ;;  %v1880_v35 = vpop.permute.xlu0 %1879 }
 0x324   : > { %2296 = vst.msk [vmem:[%s2996_s10 + $0x2e0] sm:$0xff] %vm1333_vm1, %v1906_v44 }
 0x325   : > { %2283 = vst.msk [vmem:[%s2996_s10 + $0x278] sm:$0xff] %vm1333_vm1, %v1880_v35 }
 0x32a   : > { %v1890_v39 = vpop.permute.xlu1 %1889  ;;  %v1912_v33 = vpop.permute.xlu2 %1911 }
 0x32b   : > { %2288 = vst.msk [vmem:[%s2996_s10 + $0x2a0] sm:$0xff] %vm1333_vm1, %v1890_v39  ;;  %v1886_v41 = vpop.permute.xlu0 %1885 }
 0x32c   : > { %2299 = vst.msk [vmem:[%s2996_s10 + $0x2f8] sm:$0xff] %vm1333_vm1, %v1912_v33 }
 0x32d   : > { %2286 = vst.msk [vmem:[%s2996_s10 + $0x290] sm:$0xff] %vm1333_vm1, %v1886_v41 }
 0x332   : > { %v1896_v62 = vpop.permute.xlu1 %1895 }
 0x333   : > { %2291 = vst.msk [vmem:[%s2996_s10 + $0x2b8] sm:$0xff] %vm1333_vm1, %v1896_v62  ;;  %v1892_v0 = vpop.permute.xlu0 %1891 }
 0x334   : > { %2289 = vst.msk [vmem:[%s2996_s10 + $0x2a8] sm:$0xff] %vm1333_vm1, %v1892_v0 }
 0x33a   : > { %v1902_v9 = vpop.permute.xlu1 %1901 }
 0x33b   : > { %2294 = vst.msk [vmem:[%s2996_s10 + $0x2d0] sm:$0xff] %vm1333_vm1, %v1902_v9  ;;  %v1898_v11 = vpop.permute.xlu0 %1897 }
 0x33c   : > { %2292 = vst.msk [vmem:[%s2996_s10 + $0x2c0] sm:$0xff] %vm1333_vm1, %v1898_v11 }
 0x342   : > { %v1908_v60 = vpop.permute.xlu1 %1907 }
 0x343   : > { %2297 = vst.msk [vmem:[%s2996_s10 + $0x2e8] sm:$0xff] %vm1333_vm1, %v1908_v60  ;;  %v1904_v25 = vpop.permute.xlu0 %1903 }
 0x344   : > { %2295 = vst.msk [vmem:[%s2996_s10 + $0x2d8] sm:$0xff] %vm1333_vm1, %v1904_v25 }
 0x34b   : > { %v1910_v32 = vpop.permute.xlu0 %1909 }
 0x34c   : > { %2298 = vst.msk [vmem:[%s2996_s10 + $0x2f0] sm:$0xff] %vm1333_vm1, %v1910_v32 }
 0x34d PF: > { %s17_s23 = sadd.s32 1, %s2505_s23   ;;  %s4255_s21 = smov %s2501_s22 }
 0x34e   : > { %p14_p5 = scmp.ge.s32.totalorder %s17_s23, 4   ;;  %s4256_s22 = smov %s4258_s24 }
 0x350   :  { %16 = sbr.rel (!%p14_p5) target bundleno = 2 (0x2), region = 89 }

</bundles_post_ra>
